<compile_context>
chip_gen: v6e
topology: v6e:2x2x1
jax: 0.10.0
libtpu: 0.0.40
codegen_flags: <defaults>
</compile_context>

<pallas_src>
import jax
import jax.numpy as jnp
import numpy as np
from jax import lax
from jax.experimental import pallas as pl
from jax.experimental.pallas import tpu as pltpu

EPS = 1e-5
NEG_SLOPE = 0.01  # nn.LeakyReLU() default


def _layer_norm(x, w, b):
    mu = jnp.mean(x, axis=-1, keepdims=True)
    var = jnp.mean((x - mu) ** 2, axis=-1, keepdims=True)
    return (x - mu) * lax.rsqrt(var + EPS) * w + b


def _leaky_relu(x):
    return jnp.where(x > 0, x, NEG_SLOPE * x)


def att0_7_kernel(x_ref, p_ref, o_ref):
    # x_ref: (TB, N, D) embeddings slab (f32 or bf16; math is f32)
    # p_ref: (8, Dp) packed params: rows [ln_w, ln_b, w_q, w_i, w_k, bias@[5,0]]
    # o_ref: (TB, (N-1)*D) lane-dense flat output block
    x = x_ref[...].astype(jnp.float32)                 # (TB, N, D)
    TB, N, D = x.shape

    ln_w = p_ref[0:1, 0:D]                             # (1, D)
    ln_b = p_ref[1:2, 0:D]                             # (1, D)
    w_q = p_ref[2:3, 0:D]                              # (1, D)
    w_i = p_ref[3:4, 0:D]                              # (1, D)
    w_k = p_ref[4:5, 0:D]                              # (1, D)
    bias = p_ref[5:6, 0:1].reshape(1, 1, 1)            # scalar attention bias

    # ---- LayerNorm of the input embeddings -------------------------------
    x_ln = _layer_norm(x, ln_w, ln_b)                  # (TB, N, D)

    # ---- attention scores: s[b,i,j] = q_i.Wq + k_j.Wk + iid.Wi + bias ----
    # All projections are VPU multiply + XLU lane-reduce; no MXU pushes.
    q = jnp.sum(x_ln * w_q, axis=-1, keepdims=True)            # (TB, N, 1)
    k = jnp.sum(x_ln * w_k, axis=-1)[:, None, :]                # (TB, 1, N)
    iid = jnp.sum(x_ln[:, 1:2, :] * w_i, axis=-1, keepdims=True)  # (TB, 1, 1)
    scores = _leaky_relu(q + k + iid + bias)                    # (TB, N, N)

    # softmax over the key axis ("norm")
    m = jnp.max(scores, axis=-1, keepdims=True)
    e = jnp.exp(scores - m)
    denom = jnp.sum(e, axis=-1, keepdims=True)
    alphas = e * pl.reciprocal(denom)                           # (TB, N, N)

    # ---- value = LayerNorm(key embeddings) ; weighted sum over keys ------
    v = _layer_norm(x_ln, ln_w, ln_b)                           # (TB, N, D)

    # alphas @ v unrolled as N broadcast-multiply-accumulate VPU ops
    # (avoids TB tiny batched MXU matmuls; N is small and static).
    att = alphas[:, :, 0:1] * v[:, 0:1, :]
    for j in range(1, N):
        att = att + alphas[:, :, j:j + 1] * v[:, j:j + 1, :]    # (TB, N, D)

    # em_out = LeakyReLU(att[:, 1:, :]); Dropout is identity at inference.
    em = _leaky_relu(att)                                       # (TB, N, D)

    # Lane-dense flat store: row i of the output goes to lanes [(i-1)*D, i*D).
    for i in range(1, N):
        o_ref[:, (i - 1) * D:i * D] = em[:, i, :]


def _pick_tb(B, cap=1024):
    # tb must divide B and be a multiple of 8 (or == B) so the 2-D flat output
    # block (tb, (N-1)*D) keeps a sublane-aligned second-minor dim.
    legal = [t for t in range(1, B + 1) if B % t == 0 and (t % 8 == 0 or t == B)]
    # Prefer: fits under cap, leaves >= 2 grid steps (megacore sharding on
    # v7x), then the largest such tile (amortizes ~0.35us/step overhead).
    return max(legal, key=lambda t: (t <= cap, (B // t) >= 2, t))


def att0_7_forward(x, ln_w, ln_b, w_q, w_k, w_i, att_b, *, tb=None):
    B, N, D = x.shape
    if tb is None:
        tb = _pick_tb(B)
    assert B % tb == 0 and (tb % 8 == 0 or tb == B), (B, tb)

    # Pack all small parameters into one (8, Dp) slab, lanes padded to a full
    # 128 multiple so parameter loads are unmasked; resident across grid steps.
    Dp = max(128, ((D + 127) // 128) * 128)
    params = jnp.zeros((8, Dp), dtype=jnp.float32)
    params = params.at[0, :D].set(ln_w.reshape(D))
    params = params.at[1, :D].set(ln_b.reshape(D))
    params = params.at[2, :D].set(w_q.reshape(D))
    params = params.at[3, :D].set(w_i.reshape(D))
    params = params.at[4, :D].set(w_k.reshape(D))
    params = params.at[5, 0].set(jnp.asarray(att_b).reshape(-1)[0])

    out_flat = pl.pallas_call(
        att0_7_kernel,
        out_shape=jax.ShapeDtypeStruct((B, (N - 1) * D), jnp.float32),
        grid_spec=pltpu.PrefetchScalarGridSpec(
            num_scalar_prefetch=0,
            grid=(B // tb,),
            in_specs=[
                pl.BlockSpec((tb, N, D), lambda b: (b, 0, 0)),   # embeddings slab
                pl.BlockSpec((8, Dp), lambda b: (0, 0)),         # packed params
            ],
            out_specs=pl.BlockSpec((tb, (N - 1) * D), lambda b: (b, 0)),
        ),
        compiler_params=pltpu.CompilerParams(
            dimension_semantics=("parallel",),
            vmem_limit_bytes=32 * 1024 * 1024,
        ),
    )(x, params)
    # Row-major reshape of contiguous trailing dims: free (no extra HBM pass).
    return out_flat.reshape(B, N - 1, D)


def reference(x, ln_w, ln_b, w_q, w_k, w_i, att_b):
    def ln(v):
        mu = v.mean(-1, keepdims=True)
        var = ((v - mu) ** 2).mean(-1, keepdims=True)
        return (v - mu) / jnp.sqrt(var + EPS) * ln_w + ln_b

    x_ln = ln(x)
    q = x_ln @ w_q                                      # (B, N, 1)
    k = jnp.einsum('od,bnd->bon', w_k, x_ln)            # (B, 1, N)
    iid = x_ln[:, 1:2, :] @ w_i                         # (B, 1, 1)
    s = q + k + iid + att_b[0, 0]
    s = jnp.where(s > 0, s, NEG_SLOPE * s)
    a = jax.nn.softmax(s, axis=-1)
    v = ln(x_ln)
    out = (a @ v)[:, 1:, :]
    return jnp.where(out > 0, out, NEG_SLOPE * out)


if __name__ == "__main__":
    B, N, D = 16, 8, 32       # batch, #nodes (seq), em_dim

    key = jax.random.PRNGKey(0)
    kx, kq, kk, ki, kw, kb = jax.random.split(key, 6)

    x = jax.random.normal(kx, (B, N, D), dtype=jnp.float32)

    # Non-trivial LN affine params to exercise the full code path.
    ln_w = 1.0 + 0.1 * jax.random.normal(kw, (1, D), dtype=jnp.float32)
    ln_b = 0.1 * jax.random.normal(kb, (1, D), dtype=jnp.float32)
    # Attention Linear(3D -> 1) split into its q / k / iid column blocks.
    w_q = 0.1 * jax.random.normal(kq, (D, 1), dtype=jnp.float32)
    w_k = 0.1 * jax.random.normal(kk, (1, D), dtype=jnp.float32)
    w_i = 0.1 * jax.random.normal(ki, (D, 1), dtype=jnp.float32)
    att_b = jnp.array([[0.05]], dtype=jnp.float32)

    out = att0_7_forward(x, ln_w, ln_b, w_q, w_k, w_i, att_b)   # auto tb=8, grid=2
    out = jax.block_until_ready(out)

    ref = reference(x, ln_w, ln_b, w_q, w_k, w_i, att_b)
    assert out.shape == (B, N - 1, D), out.shape
    np.testing.assert_allclose(np.asarray(out), np.asarray(ref), atol=1e-4, rtol=1e-4)

    print("KERNEL_OK")
</pallas_src>

<mosaic_0001>
module attributes {stable_mosaic.version = 11 : i64} {
  func.func @att0_7_kernel(%arg0: i32, %arg1: memref<8x8x32xf32, #tpu.memory_space<vmem>>, %arg2: memref<8x128xf32, #tpu.memory_space<vmem>>, %arg3: memref<8x224xf32, #tpu.memory_space<vmem>>) attributes {dimension_semantics = [#tpu.dimension_semantics<parallel>], iteration_bounds = array<i64: 2>, scalar_prefetch = 0 : i64, scratch_operands = 0 : i64, tpu.core_type = #tpu.core_type<tc>, window_params = [{transform_indices = @transform_0, window_bounds = array<i64: 8, 8, 32>}, {pipeline_mode = #tpu.pipeline_mode<synchronous>, transform_indices = @transform_1, window_bounds = array<i64: 8, 128>}, {transform_indices = @transform_2, window_bounds = array<i64: 8, 224>}]} {
    %c0 = arith.constant 0 : index
    %c0_0 = arith.constant 0 : index
    %c0_1 = arith.constant 0 : index
    %0 = vector.load %arg1[%c0, %c0_0, %c0_1] : memref<8x8x32xf32, #tpu.memory_space<vmem>>, vector<8x8x32xf32>
    %c0_2 = arith.constant 0 : index
    %c0_3 = arith.constant 0 : index
    %1 = vector.load %arg2[%c0_2, %c0_3] : memref<8x128xf32, #tpu.memory_space<vmem>>, vector<1x32xf32>
    %c1 = arith.constant 1 : index
    %c0_4 = arith.constant 0 : index
    %2 = vector.load %arg2[%c1, %c0_4] : memref<8x128xf32, #tpu.memory_space<vmem>>, vector<1x32xf32>
    %c2 = arith.constant 2 : index
    %c0_5 = arith.constant 0 : index
    %3 = vector.load %arg2[%c2, %c0_5] : memref<8x128xf32, #tpu.memory_space<vmem>>, vector<1x32xf32>
    %c3 = arith.constant 3 : index
    %c0_6 = arith.constant 0 : index
    %4 = vector.load %arg2[%c3, %c0_6] : memref<8x128xf32, #tpu.memory_space<vmem>>, vector<1x32xf32>
    %c4 = arith.constant 4 : index
    %c0_7 = arith.constant 0 : index
    %5 = vector.load %arg2[%c4, %c0_7] : memref<8x128xf32, #tpu.memory_space<vmem>>, vector<1x32xf32>
    %c5 = arith.constant 5 : index
    %c0_8 = arith.constant 0 : index
    %6 = vector.load %arg2[%c5, %c0_8] : memref<8x128xf32, #tpu.memory_space<vmem>>, vector<1x1xf32>
    %7 = vector.shape_cast %6 : vector<1x1xf32> to vector<1x1x1xf32>
    %cst = arith.constant dense<0.000000e+00> : vector<8x8xf32>
    %8 = vector.multi_reduction <add>, %0, %cst [2] : vector<8x8x32xf32> to vector<8x8xf32>
    %9 = vector.shape_cast %8 : vector<8x8xf32> to vector<8x8x1xf32>
    %cst_9 = arith.constant 3.200000e+01 : f32
    %10 = vector.broadcast %cst_9 : f32 to vector<8x8x1xf32>
    %11 = arith.divf %9, %10 : vector<8x8x1xf32>
    %12 = vector.broadcast %11 : vector<8x8x1xf32> to vector<8x8x32xf32>
    %13 = arith.subf %0, %12 : vector<8x8x32xf32>
    %14 = arith.mulf %13, %13 : vector<8x8x32xf32>
    %cst_10 = arith.constant dense<0.000000e+00> : vector<8x8xf32>
    %15 = vector.multi_reduction <add>, %14, %cst_10 [2] : vector<8x8x32xf32> to vector<8x8xf32>
    %16 = vector.shape_cast %15 : vector<8x8xf32> to vector<8x8x1xf32>
    %cst_11 = arith.constant 3.200000e+01 : f32
    %17 = vector.broadcast %cst_11 : f32 to vector<8x8x1xf32>
    %18 = arith.divf %16, %17 : vector<8x8x1xf32>
    %19 = vector.broadcast %11 : vector<8x8x1xf32> to vector<8x8x32xf32>
    %20 = arith.subf %0, %19 : vector<8x8x32xf32>
    %cst_12 = arith.constant 9.99999974E-6 : f32
    %21 = vector.broadcast %cst_12 : f32 to vector<8x8x1xf32>
    %22 = arith.addf %18, %21 : vector<8x8x1xf32>
    %23 = math.rsqrt %22 : vector<8x8x1xf32>
    %24 = vector.broadcast %23 : vector<8x8x1xf32> to vector<8x8x32xf32>
    %25 = arith.mulf %20, %24 : vector<8x8x32xf32>
    %26 = vector.shape_cast %1 : vector<1x32xf32> to vector<1x1x32xf32>
    %27 = vector.broadcast %26 : vector<1x1x32xf32> to vector<8x8x32xf32>
    %28 = arith.mulf %25, %27 : vector<8x8x32xf32>
    %29 = vector.shape_cast %2 : vector<1x32xf32> to vector<1x1x32xf32>
    %30 = vector.broadcast %29 : vector<1x1x32xf32> to vector<8x8x32xf32>
    %31 = arith.addf %28, %30 : vector<8x8x32xf32>
    %32 = vector.shape_cast %3 : vector<1x32xf32> to vector<1x1x32xf32>
    %33 = vector.broadcast %32 : vector<1x1x32xf32> to vector<8x8x32xf32>
    %34 = arith.mulf %31, %33 : vector<8x8x32xf32>
    %cst_13 = arith.constant dense<0.000000e+00> : vector<8x8xf32>
    %35 = vector.multi_reduction <add>, %34, %cst_13 [2] : vector<8x8x32xf32> to vector<8x8xf32>
    %36 = vector.shape_cast %35 : vector<8x8xf32> to vector<8x8x1xf32>
    %37 = vector.shape_cast %5 : vector<1x32xf32> to vector<1x1x32xf32>
    %38 = vector.broadcast %37 : vector<1x1x32xf32> to vector<8x8x32xf32>
    %39 = arith.mulf %31, %38 : vector<8x8x32xf32>
    %cst_14 = arith.constant dense<0.000000e+00> : vector<8x8xf32>
    %40 = vector.multi_reduction <add>, %39, %cst_14 [2] : vector<8x8x32xf32> to vector<8x8xf32>
    %41 = vector.shape_cast %40 : vector<8x8xf32> to vector<8x1x8xf32>
    %42 = vector.extract_strided_slice %31 {offsets = [0, 1, 0], sizes = [8, 1, 32], strides = [1, 1, 1]} : vector<8x8x32xf32> to vector<8x1x32xf32>
    %43 = vector.shape_cast %4 : vector<1x32xf32> to vector<1x1x32xf32>
    %44 = vector.broadcast %43 : vector<1x1x32xf32> to vector<8x1x32xf32>
    %45 = arith.mulf %42, %44 : vector<8x1x32xf32>
    %cst_15 = arith.constant dense<0.000000e+00> : vector<8x1xf32>
    %46 = vector.multi_reduction <add>, %45, %cst_15 [2] : vector<8x1x32xf32> to vector<8x1xf32>
    %47 = vector.shape_cast %46 : vector<8x1xf32> to vector<8x1x1xf32>
    %48 = vector.broadcast %36 : vector<8x8x1xf32> to vector<8x8x8xf32>
    %49 = vector.broadcast %41 : vector<8x1x8xf32> to vector<8x8x8xf32>
    %50 = arith.addf %48, %49 : vector<8x8x8xf32>
    %51 = vector.broadcast %47 : vector<8x1x1xf32> to vector<8x8x8xf32>
    %52 = arith.addf %50, %51 : vector<8x8x8xf32>
    %53 = vector.broadcast %7 : vector<1x1x1xf32> to vector<8x8x8xf32>
    %54 = arith.addf %52, %53 : vector<8x8x8xf32>
    %cst_16 = arith.constant 0.000000e+00 : f32
    %55 = vector.broadcast %cst_16 : f32 to vector<8x8x8xf32>
    %56 = arith.cmpf ogt, %54, %55 : vector<8x8x8xf32>
    %cst_17 = arith.constant 0.00999999977 : f32
    %57 = vector.broadcast %cst_17 : f32 to vector<8x8x8xf32>
    %58 = arith.mulf %57, %54 : vector<8x8x8xf32>
    %59 = arith.select %56, %54, %58 : vector<8x8x8xi1>, vector<8x8x8xf32>
    %cst_18 = arith.constant dense<0xFF800000> : vector<8x8xf32>
    %60 = vector.multi_reduction <maximumf>, %59, %cst_18 [2] : vector<8x8x8xf32> to vector<8x8xf32>
    %61 = vector.shape_cast %60 : vector<8x8xf32> to vector<8x8x1xf32>
    %62 = vector.broadcast %61 : vector<8x8x1xf32> to vector<8x8x8xf32>
    %63 = arith.subf %59, %62 : vector<8x8x8xf32>
    %64 = math.exp %63 : vector<8x8x8xf32>
    %cst_19 = arith.constant dense<0.000000e+00> : vector<8x8xf32>
    %65 = vector.multi_reduction <add>, %64, %cst_19 [2] : vector<8x8x8xf32> to vector<8x8xf32>
    %66 = vector.shape_cast %65 : vector<8x8xf32> to vector<8x8x1xf32>
    %67 = tpu.reciprocal %66 : vector<8x8x1xf32> -> vector<8x8x1xf32>
    %68 = vector.broadcast %67 : vector<8x8x1xf32> to vector<8x8x8xf32>
    %69 = arith.mulf %64, %68 : vector<8x8x8xf32>
    %cst_20 = arith.constant dense<0.000000e+00> : vector<8x8xf32>
    %70 = vector.multi_reduction <add>, %31, %cst_20 [2] : vector<8x8x32xf32> to vector<8x8xf32>
    %71 = vector.shape_cast %70 : vector<8x8xf32> to vector<8x8x1xf32>
    %cst_21 = arith.constant 3.200000e+01 : f32
    %72 = vector.broadcast %cst_21 : f32 to vector<8x8x1xf32>
    %73 = arith.divf %71, %72 : vector<8x8x1xf32>
    %74 = vector.broadcast %73 : vector<8x8x1xf32> to vector<8x8x32xf32>
    %75 = arith.subf %31, %74 : vector<8x8x32xf32>
    %76 = arith.mulf %75, %75 : vector<8x8x32xf32>
    %cst_22 = arith.constant dense<0.000000e+00> : vector<8x8xf32>
    %77 = vector.multi_reduction <add>, %76, %cst_22 [2] : vector<8x8x32xf32> to vector<8x8xf32>
    %78 = vector.shape_cast %77 : vector<8x8xf32> to vector<8x8x1xf32>
    %cst_23 = arith.constant 3.200000e+01 : f32
    %79 = vector.broadcast %cst_23 : f32 to vector<8x8x1xf32>
    %80 = arith.divf %78, %79 : vector<8x8x1xf32>
    %81 = vector.broadcast %73 : vector<8x8x1xf32> to vector<8x8x32xf32>
    %82 = arith.subf %31, %81 : vector<8x8x32xf32>
    %cst_24 = arith.constant 9.99999974E-6 : f32
    %83 = vector.broadcast %cst_24 : f32 to vector<8x8x1xf32>
    %84 = arith.addf %80, %83 : vector<8x8x1xf32>
    %85 = math.rsqrt %84 : vector<8x8x1xf32>
    %86 = vector.broadcast %85 : vector<8x8x1xf32> to vector<8x8x32xf32>
    %87 = arith.mulf %82, %86 : vector<8x8x32xf32>
    %88 = vector.shape_cast %1 : vector<1x32xf32> to vector<1x1x32xf32>
    %89 = vector.broadcast %88 : vector<1x1x32xf32> to vector<8x8x32xf32>
    %90 = arith.mulf %87, %89 : vector<8x8x32xf32>
    %91 = vector.shape_cast %2 : vector<1x32xf32> to vector<1x1x32xf32>
    %92 = vector.broadcast %91 : vector<1x1x32xf32> to vector<8x8x32xf32>
    %93 = arith.addf %90, %92 : vector<8x8x32xf32>
    %94 = vector.extract_strided_slice %69 {offsets = [0, 0, 0], sizes = [8, 8, 1], strides = [1, 1, 1]} : vector<8x8x8xf32> to vector<8x8x1xf32>
    %95 = vector.extract_strided_slice %93 {offsets = [0, 0, 0], sizes = [8, 1, 32], strides = [1, 1, 1]} : vector<8x8x32xf32> to vector<8x1x32xf32>
    %96 = vector.broadcast %94 : vector<8x8x1xf32> to vector<8x8x32xf32>
    %97 = vector.broadcast %95 : vector<8x1x32xf32> to vector<8x8x32xf32>
    %98 = arith.mulf %96, %97 : vector<8x8x32xf32>
    %99 = vector.extract_strided_slice %69 {offsets = [0, 0, 1], sizes = [8, 8, 1], strides = [1, 1, 1]} : vector<8x8x8xf32> to vector<8x8x1xf32>
    %100 = vector.extract_strided_slice %93 {offsets = [0, 1, 0], sizes = [8, 1, 32], strides = [1, 1, 1]} : vector<8x8x32xf32> to vector<8x1x32xf32>
    %101 = vector.broadcast %99 : vector<8x8x1xf32> to vector<8x8x32xf32>
    %102 = vector.broadcast %100 : vector<8x1x32xf32> to vector<8x8x32xf32>
    %103 = arith.mulf %101, %102 : vector<8x8x32xf32>
    %104 = arith.addf %98, %103 : vector<8x8x32xf32>
    %105 = vector.extract_strided_slice %69 {offsets = [0, 0, 2], sizes = [8, 8, 1], strides = [1, 1, 1]} : vector<8x8x8xf32> to vector<8x8x1xf32>
    %106 = vector.extract_strided_slice %93 {offsets = [0, 2, 0], sizes = [8, 1, 32], strides = [1, 1, 1]} : vector<8x8x32xf32> to vector<8x1x32xf32>
    %107 = vector.broadcast %105 : vector<8x8x1xf32> to vector<8x8x32xf32>
    %108 = vector.broadcast %106 : vector<8x1x32xf32> to vector<8x8x32xf32>
    %109 = arith.mulf %107, %108 : vector<8x8x32xf32>
    %110 = arith.addf %104, %109 : vector<8x8x32xf32>
    %111 = vector.extract_strided_slice %69 {offsets = [0, 0, 3], sizes = [8, 8, 1], strides = [1, 1, 1]} : vector<8x8x8xf32> to vector<8x8x1xf32>
    %112 = vector.extract_strided_slice %93 {offsets = [0, 3, 0], sizes = [8, 1, 32], strides = [1, 1, 1]} : vector<8x8x32xf32> to vector<8x1x32xf32>
    %113 = vector.broadcast %111 : vector<8x8x1xf32> to vector<8x8x32xf32>
    %114 = vector.broadcast %112 : vector<8x1x32xf32> to vector<8x8x32xf32>
    %115 = arith.mulf %113, %114 : vector<8x8x32xf32>
    %116 = arith.addf %110, %115 : vector<8x8x32xf32>
    %117 = vector.extract_strided_slice %69 {offsets = [0, 0, 4], sizes = [8, 8, 1], strides = [1, 1, 1]} : vector<8x8x8xf32> to vector<8x8x1xf32>
    %118 = vector.extract_strided_slice %93 {offsets = [0, 4, 0], sizes = [8, 1, 32], strides = [1, 1, 1]} : vector<8x8x32xf32> to vector<8x1x32xf32>
    %119 = vector.broadcast %117 : vector<8x8x1xf32> to vector<8x8x32xf32>
    %120 = vector.broadcast %118 : vector<8x1x32xf32> to vector<8x8x32xf32>
    %121 = arith.mulf %119, %120 : vector<8x8x32xf32>
    %122 = arith.addf %116, %121 : vector<8x8x32xf32>
    %123 = vector.extract_strided_slice %69 {offsets = [0, 0, 5], sizes = [8, 8, 1], strides = [1, 1, 1]} : vector<8x8x8xf32> to vector<8x8x1xf32>
    %124 = vector.extract_strided_slice %93 {offsets = [0, 5, 0], sizes = [8, 1, 32], strides = [1, 1, 1]} : vector<8x8x32xf32> to vector<8x1x32xf32>
    %125 = vector.broadcast %123 : vector<8x8x1xf32> to vector<8x8x32xf32>
    %126 = vector.broadcast %124 : vector<8x1x32xf32> to vector<8x8x32xf32>
    %127 = arith.mulf %125, %126 : vector<8x8x32xf32>
    %128 = arith.addf %122, %127 : vector<8x8x32xf32>
    %129 = vector.extract_strided_slice %69 {offsets = [0, 0, 6], sizes = [8, 8, 1], strides = [1, 1, 1]} : vector<8x8x8xf32> to vector<8x8x1xf32>
    %130 = vector.extract_strided_slice %93 {offsets = [0, 6, 0], sizes = [8, 1, 32], strides = [1, 1, 1]} : vector<8x8x32xf32> to vector<8x1x32xf32>
    %131 = vector.broadcast %129 : vector<8x8x1xf32> to vector<8x8x32xf32>
    %132 = vector.broadcast %130 : vector<8x1x32xf32> to vector<8x8x32xf32>
    %133 = arith.mulf %131, %132 : vector<8x8x32xf32>
    %134 = arith.addf %128, %133 : vector<8x8x32xf32>
    %135 = vector.extract_strided_slice %69 {offsets = [0, 0, 7], sizes = [8, 8, 1], strides = [1, 1, 1]} : vector<8x8x8xf32> to vector<8x8x1xf32>
    %136 = vector.extract_strided_slice %93 {offsets = [0, 7, 0], sizes = [8, 1, 32], strides = [1, 1, 1]} : vector<8x8x32xf32> to vector<8x1x32xf32>
    %137 = vector.broadcast %135 : vector<8x8x1xf32> to vector<8x8x32xf32>
    %138 = vector.broadcast %136 : vector<8x1x32xf32> to vector<8x8x32xf32>
    %139 = arith.mulf %137, %138 : vector<8x8x32xf32>
    %140 = arith.addf %134, %139 : vector<8x8x32xf32>
    %cst_25 = arith.constant 0.000000e+00 : f32
    %141 = vector.broadcast %cst_25 : f32 to vector<8x8x32xf32>
    %142 = arith.cmpf ogt, %140, %141 : vector<8x8x32xf32>
    %cst_26 = arith.constant 0.00999999977 : f32
    %143 = vector.broadcast %cst_26 : f32 to vector<8x8x32xf32>
    %144 = arith.mulf %143, %140 : vector<8x8x32xf32>
    %145 = arith.select %142, %140, %144 : vector<8x8x32xi1>, vector<8x8x32xf32>
    %146 = vector.extract_strided_slice %145 {offsets = [0, 1, 0], sizes = [8, 1, 32], strides = [1, 1, 1]} : vector<8x8x32xf32> to vector<8x1x32xf32>
    %147 = vector.shape_cast %146 : vector<8x1x32xf32> to vector<8x32xf32>
    %c0_27 = arith.constant 0 : index
    %c0_28 = arith.constant 0 : index
    %148 = vector.load %arg3[%c0_27, %c0_28] : memref<8x224xf32, #tpu.memory_space<vmem>>, vector<8x32xf32>
    tpu.vector_store %arg3[%c0_27, %c0_28], %147 {strides = array<i32>} : memref<8x224xf32, #tpu.memory_space<vmem>>, vector<8x32xf32>,
    %149 = vector.extract_strided_slice %145 {offsets = [0, 2, 0], sizes = [8, 1, 32], strides = [1, 1, 1]} : vector<8x8x32xf32> to vector<8x1x32xf32>
    %150 = vector.shape_cast %149 : vector<8x1x32xf32> to vector<8x32xf32>
    %c0_29 = arith.constant 0 : index
    %c32 = arith.constant 32 : index
    %151 = vector.load %arg3[%c0_29, %c32] : memref<8x224xf32, #tpu.memory_space<vmem>>, vector<8x32xf32>
    tpu.vector_store %arg3[%c0_29, %c32], %150 {strides = array<i32>} : memref<8x224xf32, #tpu.memory_space<vmem>>, vector<8x32xf32>,
    %152 = vector.extract_strided_slice %145 {offsets = [0, 3, 0], sizes = [8, 1, 32], strides = [1, 1, 1]} : vector<8x8x32xf32> to vector<8x1x32xf32>
    %153 = vector.shape_cast %152 : vector<8x1x32xf32> to vector<8x32xf32>
    %c0_30 = arith.constant 0 : index
    %c64 = arith.constant 64 : index
    %154 = vector.load %arg3[%c0_30, %c64] : memref<8x224xf32, #tpu.memory_space<vmem>>, vector<8x32xf32>
    tpu.vector_store %arg3[%c0_30, %c64], %153 {strides = array<i32>} : memref<8x224xf32, #tpu.memory_space<vmem>>, vector<8x32xf32>,
    %155 = vector.extract_strided_slice %145 {offsets = [0, 4, 0], sizes = [8, 1, 32], strides = [1, 1, 1]} : vector<8x8x32xf32> to vector<8x1x32xf32>
    %156 = vector.shape_cast %155 : vector<8x1x32xf32> to vector<8x32xf32>
    %c0_31 = arith.constant 0 : index
    %c96 = arith.constant 96 : index
    %157 = vector.load %arg3[%c0_31, %c96] : memref<8x224xf32, #tpu.memory_space<vmem>>, vector<8x32xf32>
    tpu.vector_store %arg3[%c0_31, %c96], %156 {strides = array<i32>} : memref<8x224xf32, #tpu.memory_space<vmem>>, vector<8x32xf32>,
    %158 = vector.extract_strided_slice %145 {offsets = [0, 5, 0], sizes = [8, 1, 32], strides = [1, 1, 1]} : vector<8x8x32xf32> to vector<8x1x32xf32>
    %159 = vector.shape_cast %158 : vector<8x1x32xf32> to vector<8x32xf32>
    %c0_32 = arith.constant 0 : index
    %c128 = arith.constant 128 : index
    %160 = vector.load %arg3[%c0_32, %c128] : memref<8x224xf32, #tpu.memory_space<vmem>>, vector<8x32xf32>
    tpu.vector_store %arg3[%c0_32, %c128], %159 {strides = array<i32>} : memref<8x224xf32, #tpu.memory_space<vmem>>, vector<8x32xf32>,
    %161 = vector.extract_strided_slice %145 {offsets = [0, 6, 0], sizes = [8, 1, 32], strides = [1, 1, 1]} : vector<8x8x32xf32> to vector<8x1x32xf32>
    %162 = vector.shape_cast %161 : vector<8x1x32xf32> to vector<8x32xf32>
    %c0_33 = arith.constant 0 : index
    %c160 = arith.constant 160 : index
    %163 = vector.load %arg3[%c0_33, %c160] : memref<8x224xf32, #tpu.memory_space<vmem>>, vector<8x32xf32>
    tpu.vector_store %arg3[%c0_33, %c160], %162 {strides = array<i32>} : memref<8x224xf32, #tpu.memory_space<vmem>>, vector<8x32xf32>,
    %164 = vector.extract_strided_slice %145 {offsets = [0, 7, 0], sizes = [8, 1, 32], strides = [1, 1, 1]} : vector<8x8x32xf32> to vector<8x1x32xf32>
    %165 = vector.shape_cast %164 : vector<8x1x32xf32> to vector<8x32xf32>
    %c0_34 = arith.constant 0 : index
    %c192 = arith.constant 192 : index
    %166 = vector.load %arg3[%c0_34, %c192] : memref<8x224xf32, #tpu.memory_space<vmem>>, vector<8x32xf32>
    tpu.vector_store %arg3[%c0_34, %c192], %165 {strides = array<i32>} : memref<8x224xf32, #tpu.memory_space<vmem>>, vector<8x32xf32>,
    return
  }
  func.func @transform_0(%arg0: i32) -> (i32, i32, i32) {
    %c0_i32 = arith.constant 0 : i32
    %c0_i32_0 = arith.constant 0 : i32
    %c0_i32_1 = arith.constant 0 : i32
    return %arg0, %c0_i32, %c0_i32_0 : i32, i32, i32
  }
  func.func @transform_1(%arg0: i32) -> (i32, i32) {
    %c0_i32 = arith.constant 0 : i32
    %c0_i32_0 = arith.constant 0 : i32
    %c0_i32_1 = arith.constant 0 : i32
    return %c0_i32, %c0_i32_0 : i32, i32
  }
  func.func @transform_2(%arg0: i32) -> (i32, i32) {
    %c0_i32 = arith.constant 0 : i32
    %c0_i32_0 = arith.constant 0 : i32
    return %arg0, %c0_i32 : i32, i32
  }
}

</mosaic_0001>

<bundles_post_ra>
// kernel: tpu_custom_call.1
= control target key start
LH: loop header
LB: loop body
LE: loop exit
PB: predicated region body
PF: predicated region fallthrough
CT: control target
= control target key end

     0   :  { %7 = vsyncpa [#allocation3], 0  ;;  %s3071_s0 = inlined_call_operand.hbm [shape: f32[16,8,32], index: 0, kind: input, shape index: {}]   ;;  %s3072_s1 = inlined_call_operand.hbm [shape: f32[8,128], index: 1, kind: input, shape index: {}]   ;;  %s3073_s2 = inlined_call_operand.hbm [shape: f32[16,224], index: 2, kind: output, shape index: {}]  }
   0x1   :  { %9 = vsyncpa [#allocation3 + $0x1], 0 }
   0x2   :  { %10 = vsyncpa [#allocation6], 0 }
   0x3   :  { %11 = vsyncpa [#allocation4], 0 }
   0x4   :  { %13 = vsyncpa [#allocation4 + $0x1], 0  ;;  %s2065_s9 = smov 0   ;;  %s2067_s10 = smov 0  }
   0x5   :  { %s2069_s11 = smov 0   ;;  %s2071_s12 = smov 0  }
   0x6 LB: > { %s2086_s13 = sadd.s32 4294967295, %s2032_s12   ;;  %s1718_s14 = sadd.s32 4294967294, %s2032_s12   ;;  %s2032_s12 = sphi %s2071_s12, %s3099_s12   ;;  %s2028_s11 = sphi %s2069_s11, %s3098_s11   ;;  %s2024_s10 = sphi %s2067_s10, %s3097_s10   ;;  %s2020_s9 = sphi %s2065_s9, %s3096_s9  }
   0x7   : > { %s2090_s15 = sadd.s32 1, %s2032_s12   ;;  %s26_s16 = sadd.s32 1, %s2028_s11 }
   0x8   : > { %s23_s17 = ssub.s32 %s2032_s12, %s2090_s15  ;;  %p33_p0 = scmp.ne.s32.totalorder %s2028_s11, %s2024_s10 }
   0x9   : > { %p24_p1 = scmp.eq.s32.totalorder %s23_s17, 0  ;;  %p34_p2 = scmp.eq.s32.totalorder %s2032_s12, 0 }
   0xa   : > { %p39_p3 = scmp.ne.s32.totalorder %s2024_s10, %s2020_s9  ;;  %p3074_p4 = scmp.eq.s32.totalorder %s2086_s13, 0 }
   0xb   : > { %s2102_s18 = scalar_select %p24_p1, %s2028_s11, %s26_s16  }
   0xc   : > { %p2104_p5 = por %p34_p2, %p33_p0  ;;  %p2110_p6 = por %p3074_p4, %p39_p3 }
   0xd   : > { %p84_p7 = scmp.eq.s32.totalorder %s2086_s13, 1  ;;  %p90_p8 = scmp.eq.s32.totalorder %s1718_s14, 1 }
   0xe   : > { %s3079_s20 = scalar_select %p2110_p6, 1, 0 }
   0xf   : > { %p1719_p9 = scmp.ge.s32.totalorder %s2032_s12, 1  ;;  %p97_p10 = scmp.lt.s32.totalorder %s2032_s12, 3 }
  0x10   : > { %p2117_p11 = por %p84_p7, %p33_p0  ;;  %p2121_p12 = por %p90_p8, %p39_p3 }
  0x11   : > { %p2125_p13 = pnand %p1719_p9, %p97_p10  ;;  %s2034_s24 = smov [#allocation5]  }
  0x12   : > { %s3080_s21 = scalar_select %p2117_p11, 1, 0 }
  0x13   : > { %s3081_s22 = scalar_select %p2121_p12, 1, 0 }
  0x14   : > { %s3082_s23 = scalar_select %p2125_p13, 1, 0 }
  0x15   : > { %p1750_p2 = pneg %p2125_p13  ;;  %s110_s25 = sshll.u32 %s2034_s24, 4  ;;  %s111_s25 = int_to_ptr.vmem [resolvable:$true] %s110_s25 }
  0x16   : > { %p1763_p4 = scmp.lt.s32.totalorder %s2032_s12, 2  ;;  %p3083_p0 = scmp.eq.s32.totalorder %s2086_s13, 0 }
  0x17   : > { %s121_s27 = sand.u32 1, %s2028_s11   ;;  %s1921_s30 = scalar_lea.vmem %s111_s25, 128 }
  0x18   : > { %p2135_p7 = pnand %p1750_p2, %p3083_p0  ;;  %p2142_p3 = pnand %p1763_p4, %p2104_p5 }
  0x19   : > { %s1722_s29 = sshll.u32 %s121_s27, 6  ;;  %p1922_p9 = scmp.ne.s32.totalorder %s111_s25, %s1921_s30 }
  0x1a   : > { %p1912_p8 = pneg %p2135_p7  ;;  %p1929_p12 = scmp.lt.s32.totalorder %s111_s25, %s111_s25 }
  0x1b   : > { %p1930_p11 = scmp.lt.s32.totalorder %s1921_s30, %s1921_s30 }
  0x1c   : > { %p1924_p10 = pnand %p1922_p9, %p1912_p8 }
  0x1d   : > { %p1931_p2 = por %p1930_p11, %p1929_p12 }
  0x1e   : > { %p1925_p1 = pneg %p1924_p10 }
  0x20   : > { %p1932_p0 = pnand %p1931_p2, %p1925_p1 }
  0x22   : > { %1935 = shalt.err (!%p1932_p0)
}
  0x23   : > { %1753 = dma.hbm_to_vmem [thread:$0]  (!%p2135_p7), %s3072_s1, 128, %s111_s25, [#allocation6]  }
  0x24   : > { %s1738_s5 = sshll.u32 %s2032_s12, 10  ;;  %s125_s6 = scalar_lea.vmem [#allocation2], %s1722_s29 }
  0x25   : > { %s132_s7 = sshll.u32 %s125_s6, 4  ;;  %s2157_s16 = scalar_lea.hbm %s3071_s0, %s1738_s5  ;;  %s2159_s7 = int_to_ptr.vmem [resolvable:$true] %s132_s7 }
  0x26   : > { %s2161_s17 = scalar_lea.sflag [#allocation3], %s121_s27  ;;  %s1936_s19 = scalar_lea.hbm %s2157_s16, 1024 }
  0x27   : > { %p1937_p4 = scmp.ne.s32.totalorder %s2157_s16, %s1936_s19  ;;  %p1938_p5 = pneg %p2142_p3 }
  0x28   : > { %s1941_s26 = scalar_lea.hbm %s3071_s0, 2048  ;;  %p1942_p1 = scmp.lt.s32.totalorder %s2157_s16, %s3071_s0 }
  0x29   : > { %p1939_p11 = pnand %p1938_p5, %p1937_p4  ;;  %p1943_p7 = scmp.lt.s32.totalorder %s1941_s26, %s1936_s19 }
  0x2b   : > { %p1940_p12 = pneg %p1939_p11  ;;  %p1944_p8 = por %p1943_p7, %p1942_p1 }
  0x2d   : > { %p1945_p9 = pnand %p1944_p8, %p1940_p12 }
  0x2f   : > { %1948 = shalt.err (!%p1945_p9)
}
  0x30   : > { %s1949_s27 = scalar_lea.vmem %s2159_s7, 1024  ;;  %s2035_s3 = smov [#allocation2]  }
  0x31   : > { %p1950_p10 = scmp.ne.s32.totalorder %s2159_s7, %s1949_s27  ;;  %s1954_s4 = sshll.u32 %s2035_s3, 4  ;;  %s1955_s4 = int_to_ptr.vmem [resolvable:$false] %s1954_s4 }
  0x32   : > { %s1956_s5 = scalar_lea.vmem %s1955_s4, 2048  ;;  %p1957_p4 = scmp.lt.s32.totalorder %s2159_s7, %s1955_s4 }
  0x33   : > { %p1952_p2 = pnand %p1950_p10, %p1938_p5  ;;  %p1958_p11 = scmp.lt.s32.totalorder %s1956_s5, %s1949_s27 }
  0x35   : > { %p1953_p0 = pneg %p1952_p2  ;;  %p1959_p6 = por %p1958_p11, %p1957_p4 }
  0x37   : > { %p1960_p13 = pnand %p1959_p6, %p1953_p0 }
  0x39   : > { %1963 = shalt.err (!%p1960_p13)
}
  0x3a   : > { %s2036_s6 = smov 128   ;;  %s2037_s8 = smov 8  }
  0x3b   : > { %1757 = dma.hbm_to_vmem [thread:$0]  (!%p2142_p3), %s2157_s16, 1024, %s2159_s7, %s2161_s17, %s2036_s6, %s2036_s6, %s2037_s8  }
  0x3c   : > { %p3086_p5 = scmp.ne.s32.totalorder %s3082_s23, 0 }
  0x3d   : > { %s2185_s14 = sand.u32 (!%p3086_p5), 1, %s2024_s10   ;;  %p3087_p6 = scmp.ne.s32.totalorder (!%p3086_p5), %s3079_s20, 0 }
  0x3e   : > { %144 = sbr.rel (%p3086_p5) target bundleno = 1348 (0x544), region = 28  ;;  %s1726_s19 = sshll.u32 (!%p3086_p5), %s2185_s14, 6 }
  0x3f   : > { %s147_s24 = scalar_lea.sflag (!%p3086_p5), [#allocation3], %s2185_s14  ;;  %s150_s25 = scalar_lea.vmem (!%p3086_p5), [#allocation2], %s1726_s19 }
  0x43   : > { %2007 = dma.done.wait (%p3087_p6), %s147_s24, 1024  }
  0x44   : > { %2009 = vsyncadd (%p3087_p6), %s147_s24, 4294966272  ;;  %p3088_p13 = scmp.eq.s32.totalorder %s2086_s13, 0 }
  0x46   : > { %2011 = dma.done.wait (%p3088_p13), [#allocation6], 128   ;;  %p3089_p3 = pmov %p3088_p13 }
  0x47   : > { %vm190_vm0 = vcmask 261120   ;;  %v176_v0 = vld [vmem:[%s150_s25] sm:$0xff]  ;;  %v178_v1 = vld [vmem:[%s150_s25 + $0x10] sm:$0xff]  ;;  %v177_v2 = vld [vmem:[%s150_s25 + $0x8] sm:$0xff]  ;;  %vm403_vm1 = vcmask 254977   ;;  %vm617_vm5 = vcmask 64512  }
  0x48   : > { %2013 = vsyncadd (%p3089_p3), [#allocation6], 4294967168  ;;  %v191_v3 = vsel %vm190_vm0, %v176_v0, 0.0  ;;  %v197_v4 = vsel %vm190_vm0, %v178_v1, 0.0  ;;  %v179_v5 = vld [vmem:[%s150_s25 + $0x18] sm:$0xff]  ;;  %v194_v6 = vsel %vm190_vm0, %v177_v2, 0.0 }
  0x49   : > { %192 = vadd.xlane.f32.xlu0 %v191_v3  ;;  %198 = vadd.xlane.f32.xlu1 %v197_v4  ;;  %v200_v7 = vsel %vm190_vm0, %v179_v5, 0.0  ;;  %v180_v8 = vld [vmem:[%s150_s25 + $0x20] sm:$0xff]  ;;  %v181_v9 = vld [vmem:[%s150_s25 + $0x28] sm:$0xff]  ;;  %v182_v12 = vld [vmem:[%s150_s25 + $0x30] sm:$0xff]  ;;  %vm470_vm13 = vcmask 1041409   ;;  %vm471_vm14 = vcmask 1042434  }
  0x4a   : > { %v203_v10 = vsel %vm190_vm0, %v180_v8, 0.0  ;;  %v206_v11 = vsel %vm190_vm0, %v181_v9, 0.0  ;;  %v183_v13 = vld [vmem:[%s150_s25 + $0x38] sm:$0xff]  ;;  %v209_v14 = vsel %vm190_vm0, %v182_v12, 0.0  ;;  %v189_v56 = vld [vmem:[#allocation5 + $0x5] sm:$0x1] }
  0x4b   : > { %v212_v15 = vsel %vm190_vm0, %v183_v13, 0.0  ;;  %1740 = vpush %v189_v56  ;;  %s1728_s23 = sshll.u32 %s2185_s14, 4  ;;  %s2046_s28 = smov 64  }
  0x4c   : > { %s2047_s7 = smov 32   ;;  %s174_s16 = scalar_lea.vmem [#allocation7], %s1728_s23 }
  0x4d   : > { %195 = vadd.xlane.f32.xlu0 %v194_v6  ;;  %201 = vadd.xlane.f32.xlu1 %v200_v7  ;;  %s2048_s17 = smov 96   ;;  %s1739_s26 = sshll.u32 %s2086_s13, 8 }
  0x4e   : > { %s1638_s29 = sshll.u32 %s174_s16, 4  ;;  %s3034_s3 = scalar_lea.hbm %s3073_s2, %s1739_s26  ;;  %s1639_s29 = int_to_ptr.vmem [resolvable:$true] %s1638_s29 }
  0x4f   : > { %s1624_s4 = scalar_lea.sflag [#allocation4], %s2185_s14  ;;  %s1964_s5 = scalar_lea.vmem %s1639_s29, 256 }
  0x50   : > { %p1965_p12 = scmp.ne.s32.totalorder %s1639_s29, %s1964_s5  ;;  %p3093_p1 = scmp.ne.s32.totalorder %s3080_s21, 0 }
  0x51   : > { %204 = vadd.xlane.f32.xlu0 %v203_v10  ;;  %207 = vadd.xlane.f32.xlu1 %v206_v11  ;;  %s2049_s6 = smov [#allocation7]  }
  0x52   : > { %p1966_p7 = pnand %p1965_p12, %p3093_p1  ;;  %s1968_s8 = sshll.u32 %s2049_s6, 4  ;;  %s1969_s8 = int_to_ptr.vmem [resolvable:$false] %s1968_s8 }
  0x53   : > { %s1970_s13 = scalar_lea.vmem %s1969_s8, 512  ;;  %p1971_p9 = scmp.lt.s32.totalorder %s1639_s29, %s1969_s8 }
  0x54   : > { %p1967_p8 = pneg %p1966_p7  ;;  %p1972_p10 = scmp.lt.s32.totalorder %s1970_s13, %s1964_s5 }
  0x55   : > { %210 = vadd.xlane.f32.xlu0 %v209_v14  ;;  %213 = vadd.xlane.f32.xlu1 %v212_v15  ;;  %v2245_v14 = vld [vmem:[#allocation5] ss:$0 sm:$0xff] }
  0x56   : > { %p1973_p2 = por %p1972_p10, %p1971_p9 }
  0x58   : > { %p1974_p0 = pnand %p1973_p2, %p1967_p8 }
  0x7c   : > { %s1741_s20 = spop %1740 }
  0xd2   : > { %v193_v16 = vpop.xlane.xlu0 %192  ;;  %v199_v17 = vpop.xlane.xlu1 %198 }
  0xd3   : > { %v216_v18 = vmul.f32 0.03125, %v193_v16  ;;  %v218_v19 = vmul.f32 0.03125, %v199_v17  ;;  %v2248_v17 = vld [vmem:[#allocation5 + $0x1] ss:$0 sm:$0xff] }
  0xd5   : > { %v2205_v20 = vsub.f32 %v176_v0, %v216_v18  ;;  %v2207_v21 = vsub.f32 %v178_v1, %v218_v19 }
  0xd6   : > { %v196_v22 = vpop.xlane.xlu0 %195  ;;  %v202_v23 = vpop.xlane.xlu1 %201 }
  0xd7   : > { %v217_v24 = vmul.f32 0.03125, %v196_v22  ;;  %v219_v25 = vmul.f32 0.03125, %v202_v23  ;;  %v232_v26 = vmul.f32 %v2205_v20, %v2205_v20  ;;  %v234_v27 = vmul.f32 %v2207_v21, %v2207_v21 }
  0xd9   : > { %v2213_v28 = vsub.f32 %v177_v2, %v217_v24  ;;  %v2215_v29 = vsub.f32 %v179_v5, %v219_v25  ;;  %v240_v30 = vsel %vm190_vm0, %v232_v26, 0.0  ;;  %v246_v33 = vsel %vm190_vm0, %v234_v27, 0.0  ;;  %v2251_v24 = vld [vmem:[#allocation5 + $0x4] ss:$0 sm:$0xff] }
  0xda   : > { %241 = vadd.xlane.f32.xlu0 %v240_v30  ;;  %v205_v31 = vpop.xlane.xlu0 %204  ;;  %v208_v32 = vpop.xlane.xlu1 %207  ;;  %v2257_v30 = vld [vmem:[#allocation5 + $0x2] ss:$0 sm:$0xff] }
  0xdb   : > { %v220_v34 = vmul.f32 0.03125, %v205_v31  ;;  %v221_v35 = vmul.f32 0.03125, %v208_v32  ;;  %v233_v36 = vmul.f32 %v2213_v28, %v2213_v28  ;;  %v235_v37 = vmul.f32 %v2215_v29, %v2215_v29 }
  0xdd   : > { %v2223_v38 = vsub.f32 %v180_v8, %v220_v34  ;;  %v2225_v39 = vsub.f32 %v181_v9, %v221_v35  ;;  %v243_v40 = vsel %vm190_vm0, %v233_v36, 0.0  ;;  %v249_v43 = vsel %vm190_vm0, %v235_v37, 0.0 }
  0xde   : > { %247 = vadd.xlane.f32.xlu0 %v246_v33  ;;  %244 = vadd.xlane.f32.xlu1 %v243_v40  ;;  %v211_v41 = vpop.xlane.xlu0 %210  ;;  %v214_v42 = vpop.xlane.xlu1 %213 }
  0xdf   : > { %v222_v44 = vmul.f32 0.03125, %v211_v41  ;;  %v223_v45 = vmul.f32 0.03125, %v214_v42  ;;  %v236_v46 = vmul.f32 %v2223_v38, %v2223_v38  ;;  %v237_v47 = vmul.f32 %v2225_v39, %v2225_v39  ;;  %v187_v41 = vld [vmem:[#allocation5 + $0x3] sm:$0x1] }
  0xe1   : > { %v2233_v48 = vsub.f32 %v182_v12, %v222_v44  ;;  %v2235_v49 = vsub.f32 %v183_v13, %v223_v45  ;;  %v252_v50 = vsel %vm190_vm0, %v236_v46, 0.0  ;;  %v255_v51 = vsel %vm190_vm0, %v237_v47, 0.0 }
  0xe2   : > { %250 = vadd.xlane.f32.xlu1 %v249_v43  ;;  %253 = vadd.xlane.f32.xlu0 %v252_v50  ;;  %v2281_v47 = vrot.slane %v187_v41, 7 }
  0xe3   : > { %v238_v52 = vmul.f32 %v2233_v48, %v2233_v48  ;;  %v239_v53 = vmul.f32 %v2235_v49, %v2235_v49 }
  0xe5   : > { %v258_v54 = vsel %vm190_vm0, %v238_v52, 0.0  ;;  %v261_v55 = vsel %vm190_vm0, %v239_v53, 0.0 }
  0xe6   : > { %256 = vadd.xlane.f32.xlu1 %v255_v51  ;;  %259 = vadd.xlane.f32.xlu0 %v258_v54 }
  0xea   : > { %262 = vadd.xlane.f32.xlu1 %v261_v55 }
 0x163   : > { %v242_v57 = vpop.xlane.xlu0 %241 }
 0x164   : > { %v264_v58 = vmul.f32 0.03125, %v242_v57 }
 0x166   : > { %v272_v59 = vadd.f32 1e-05, %v264_v58 }
 0x167   : > { %v245_v60 = vpop.xlane.xlu1 %244  ;;  %v248_v61 = vpop.xlane.xlu0 %247 }
 0x168   : > { %1844 = vrsqrt.f32 %v272_v59  ;;  %v265_v62 = vmul.f32 0.03125, %v245_v60  ;;  %v266_v63 = vmul.f32 0.03125, %v248_v61 }
 0x16a   : > { %v273_v0 = vadd.f32 1e-05, %v265_v62  ;;  %v274_v1 = vadd.f32 1e-05, %v266_v63 }
 0x16b   : > { %v251_v2 = vpop.xlane.xlu1 %250  ;;  %v254_v3 = vpop.xlane.xlu0 %253 }
 0x16c   : > { %1846 = vrsqrt.f32 %v273_v0  ;;  %v267_v4 = vmul.f32 0.03125, %v251_v2  ;;  %v268_v5 = vmul.f32 0.03125, %v254_v3 }
 0x16d   : > { %1848 = vrsqrt.f32 %v274_v1 }
 0x16e   : > { %v275_v6 = vadd.f32 1e-05, %v267_v4  ;;  %v276_v7 = vadd.f32 1e-05, %v268_v5 }
 0x16f   : > { %v257_v8 = vpop.xlane.xlu1 %256  ;;  %v260_v11 = vpop.xlane.xlu0 %259 }
 0x170   : > { %1850 = vrsqrt.f32 %v275_v6  ;;  %v269_v9 = vmul.f32 0.03125, %v257_v8  ;;  %v270_v13 = vmul.f32 0.03125, %v260_v11 }
 0x171   : > { %1852 = vrsqrt.f32 %v276_v7 }
 0x172   : > { %v277_v10 = vadd.f32 1e-05, %v269_v9  ;;  %v278_v22 = vadd.f32 1e-05, %v270_v13 }
 0x173   : > { %v263_v16 = vpop.xlane.xlu1 %262 }
 0x174   : > { %1854 = vrsqrt.f32 %v277_v10  ;;  %v271_v23 = vmul.f32 0.03125, %v263_v16 }
 0x175   : > { %v1845_v12 = vpop.eup %1844  ;;  %1856 = vrsqrt.f32 %v278_v22 }
 0x176   : > { %v288_v15 = vmul.f32 %v1845_v12, %v2205_v20  ;;  %v279_v34 = vadd.f32 1e-05, %v271_v23 }
 0x178   : > { %v300_v18 = vmul.f32 %v2245_v14, %v288_v15  ;;  %1858 = vrsqrt.f32 %v279_v34 }
 0x179   : > { %v1847_v19 = vpop.eup %1846 }
 0x17a   : > { %v1849_v25 = vpop.eup %1848  ;;  %v289_v26 = vmul.f32 %v1847_v19, %v2213_v28  ;;  %v2255_v27 = vadd.f32 %v2248_v17, %v300_v18 }
 0x17b   : > { %v290_v20 = vmul.f32 %v1849_v25, %v2207_v21 }
 0x17c   : > { %v360_v31 = vmul.f32 %v2251_v24, %v2255_v27  ;;  %v301_v32 = vmul.f32 %v2245_v14, %v289_v26  ;;  %v324_v35 = vmul.f32 %v2257_v30, %v2255_v27  ;;  %v395_v55 = vmul.f32 %v2281_v47, %v2255_v27 }
 0x17d   : > { %v1851_v33 = vpop.eup %1850  ;;  %v302_v28 = vmul.f32 %v2245_v14, %v290_v20 }
 0x17e   : > { %v1853_v36 = vpop.eup %1852  ;;  %v291_v37 = vmul.f32 %v1851_v33, %v2215_v29  ;;  %v368_v40 = vsel %vm190_vm0, %v360_v31, 0.0  ;;  %v2269_v21 = vadd.f32 %v2248_v17, %v301_v32  ;;  %v332_v29 = vsel %vm190_vm0, %v324_v35, 0.0 }
 0x17f   : > { %v292_v42 = vmul.f32 %v1853_v36, %v2223_v38  ;;  %369 = vadd.xlane.f32.xlu0 %v368_v40  ;;  %v2273_v43 = vadd.f32 %v2248_v17, %v302_v28  ;;  %v404_v60 = vsel %vm403_vm1, %v395_v55, 0.0 }
 0x180   : > { %v361_v44 = vmul.f32 %v2251_v24, %v2269_v21  ;;  %v303_v45 = vmul.f32 %v2245_v14, %v291_v37  ;;  %v325_v46 = vmul.f32 %v2257_v30, %v2269_v21  ;;  %v396_v62 = vmul.f32 %v2281_v47, %v2269_v21 }
 0x181   : > { %v1855_v50 = vpop.eup %1854  ;;  %v362_v51 = vmul.f32 %v2251_v24, %v2273_v43  ;;  %v304_v53 = vmul.f32 %v2245_v14, %v292_v42  ;;  %v326_v2 = vmul.f32 %v2257_v30, %v2273_v43 }
 0x182   : > { %v371_v38 = vsel %vm190_vm0, %v361_v44, 0.0  ;;  %v2287_v52 = vadd.f32 %v2248_v17, %v303_v45  ;;  %v293_v54 = vmul.f32 %v1855_v50, %v2225_v39  ;;  %v335_v56 = vsel %vm190_vm0, %v325_v46, 0.0  ;;  %v1857_v61 = vpop.eup %1856 }
 0x183   : > { %372 = vadd.xlane.f32.xlu1 %v371_v38  ;;  %333 = vadd.xlane.f32.xlu0 %v332_v29  ;;  %v374_v57 = vsel %vm190_vm0, %v362_v51, 0.0  ;;  %v2298_v59 = vadd.f32 %v2248_v17, %v304_v53  ;;  %v294_v1 = vmul.f32 %v1857_v61, %v2233_v48  ;;  %v407_v4 = vsel %vm403_vm1, %v396_v62, 0.0 }
 0x184   : > { %v363_v58 = vmul.f32 %v2251_v24, %v2287_v52  ;;  %v305_v0 = vmul.f32 %v2245_v14, %v293_v54  ;;  %v327_v6 = vmul.f32 %v2257_v30, %v2287_v52  ;;  %v338_v8 = vsel %vm190_vm0, %v326_v2, 0.0 }
 0x185   : > { %v364_v63 = vmul.f32 %v2251_v24, %v2298_v59  ;;  %v1859_v3 = vpop.eup %1858  ;;  %v397_v48 = vmul.f32 %v2281_v47, %v2273_v43  ;;  %v306_v12 = vmul.f32 %v2245_v14, %v294_v1  ;;  %v398_v15 = vmul.f32 %v2281_v47, %v2287_v52 }
 0x186   : > { %v377_v39 = vsel %vm190_vm0, %v363_v58, 0.0  ;;  %v2315_v7 = vadd.f32 %v2248_v17, %v305_v0  ;;  %v295_v9 = vmul.f32 %v1859_v3, %v2235_v49  ;;  %v341_v10 = vsel %vm190_vm0, %v327_v6, 0.0 }
 0x187   : > { %336 = vadd.xlane.f32.xlu1 %v335_v56  ;;  %375 = vadd.xlane.f32.xlu0 %v374_v57  ;;  %v380_v5 = vsel %vm190_vm0, %v364_v63, 0.0  ;;  %v410_v13 = vsel %vm403_vm1, %v397_v48, 0.0  ;;  %v328_v18 = vmul.f32 %v2257_v30, %v2298_v59  ;;  %v2332_v49 = vadd.f32 %v2248_v17, %v306_v12 }
 0x188   : > { %v365_v11 = vmul.f32 %v2251_v24, %v2315_v7  ;;  %v307_v19 = vmul.f32 %v2245_v14, %v295_v9  ;;  %v413_v22 = vsel %vm403_vm1, %v398_v15, 0.0  ;;  %v399_v25 = vmul.f32 %v2281_v47, %v2298_v59 }
 0x189   : > { %v344_v23 = vsel %vm190_vm0, %v328_v18, 0.0  ;;  %v366_v26 = vmul.f32 %v2251_v24, %v2332_v49  ;;  %v329_v34 = vmul.f32 %v2257_v30, %v2315_v7  ;;  %v400_v36 = vmul.f32 %v2281_v47, %v2315_v7 }
 0x18a   : > { %v383_v16 = vsel %vm190_vm0, %v365_v11, 0.0  ;;  %v2342_v20 = vadd.f32 %v2248_v17, %v307_v19  ;;  %v416_v31 = vsel %vm403_vm1, %v399_v25, 0.0  ;;  %v330_v37 = vmul.f32 %v2257_v30, %v2332_v49 }
 0x18b   : > { %378 = vadd.xlane.f32.xlu1 %v377_v39  ;;  %405 = vadd.xlane.f32.xlu0 %v404_v60  ;;  %v386_v32 = vsel %vm190_vm0, %v366_v26, 0.0  ;;  %v347_v28 = vsel %vm190_vm0, %v329_v34, 0.0  ;;  %v419_v40 = vsel %vm403_vm1, %v400_v36, 0.0  ;;  %v401_v41 = vmul.f32 %v2281_v47, %v2332_v49 }
 0x18c   : > { %v367_v33 = vmul.f32 %v2251_v24, %v2342_v20  ;;  %v350_v24 = vsel %vm190_vm0, %v330_v37, 0.0  ;;  %v331_v42 = vmul.f32 %v2257_v30, %v2342_v20  ;;  %v402_v29 = vmul.f32 %v2281_v47, %v2342_v20 }
 0x18d   : > { %v422_v44 = vsel %vm403_vm1, %v401_v41, 0.0  ;;  %v706_v50 = vsel %vm190_vm0, %v2255_v27, 0.0  ;;  %v709_v30 = vsel %vm190_vm0, %v2269_v21, 0.0  ;;  %v712_v38 = vsel %vm190_vm0, %v2273_v43, 0.0 }
 0x18e   : > { %v389_v35 = vsel %vm190_vm0, %v367_v33, 0.0  ;;  %v353_v45 = vsel %vm190_vm0, %v331_v42, 0.0  ;;  %v425_v46 = vsel %vm403_vm1, %v402_v29, 0.0  ;;  %v715_v47 = vsel %vm190_vm0, %v2287_v52, 0.0 }
 0x18f   : > { %408 = vadd.xlane.f32.xlu1 %v407_v4  ;;  %381 = vadd.xlane.f32.xlu0 %v380_v5  ;;  %v718_v51 = vsel %vm190_vm0, %v2298_v59, 0.0  ;;  %v721_v53 = vsel %vm190_vm0, %v2315_v7, 0.0  ;;  %v724_v54 = vsel %vm190_vm0, %v2332_v49, 0.0  ;;  %v727_v55 = vsel %vm190_vm0, %v2342_v20, 0.0 }
 0x190   : > { %v436_v5 = vlaneseq  ;;  %v2398_v34 = vstv %s1741_s20 }
 0x192   : > { %v437_v48 = vand.u32 127, %v436_v5  ;;  %v2383_v9 = vshrl.u32 %v436_v5, 7 }
 0x193   : > { %339 = vadd.xlane.f32.xlu1 %v338_v8  ;;  %342 = vadd.xlane.f32.xlu0 %v341_v10 }
 0x194   : > { %v2386_v12 = vsub.s32 %v437_v48, %v2383_v9 }
 0x197   : > { %384 = vadd.xlane.f32.xlu1 %v383_v16  ;;  %411 = vadd.xlane.f32.xlu0 %v410_v13  ;;  %v2389_v13 = vsub.s32 1, %v2383_v9 }
 0x19b   : > { %414 = vadd.xlane.f32.xlu1 %v413_v22  ;;  %345 = vadd.xlane.f32.xlu0 %v344_v23 }
 0x19f   : > { %417 = vadd.xlane.f32.xlu0 %v416_v31  ;;  %387 = vadd.xlane.f32.xlu1 %v386_v32 }
 0x1a3   : > { %390 = vadd.xlane.f32.xlu0 %v389_v35  ;;  %348 = vadd.xlane.f32.xlu1 %v347_v28 }
 0x1a7   : > { %420 = vadd.xlane.f32.xlu1 %v419_v40  ;;  %351 = vadd.xlane.f32.xlu0 %v350_v24 }
 0x1ab   : > { %423 = vadd.xlane.f32.xlu1 %v422_v44  ;;  %354 = vadd.xlane.f32.xlu0 %v353_v45 }
 0x1af   : > { %426 = vadd.xlane.f32.xlu1 %v425_v46  ;;  %707 = vadd.xlane.f32.xlu0 %v706_v50 }
 0x1b3   : > { %710 = vadd.xlane.f32.xlu1 %v709_v30  ;;  %713 = vadd.xlane.f32.xlu0 %v712_v38 }
 0x1b7   : > { %716 = vadd.xlane.f32.xlu1 %v715_v47  ;;  %719 = vadd.xlane.f32.xlu0 %v718_v51 }
 0x1bb   : > { %722 = vadd.xlane.f32.xlu1 %v721_v53  ;;  %725 = vadd.xlane.f32.xlu0 %v724_v54 }
 0x1bf   : > { %728 = vadd.xlane.f32.xlu1 %v727_v55 }
 0x208   : > { %v370_v56 = vpop.xlane.xlu0 %369 }
 0x209   : > { %v441_v18 = vrot.slane %v370_v56, %v2386_v12 }
 0x20c   : > { %v373_v57 = vpop.xlane.xlu1 %372  ;;  %v334_v58 = vpop.xlane.xlu0 %333 }
 0x20d   : > { %v533_v25 = vadd.f32 %v441_v18, %v334_v58  ;;  %v445_v26 = vrot.slane %v373_v57, %v2386_v12 }
 0x210   : > { %v337_v60 = vpop.xlane.xlu1 %336  ;;  %v376_v61 = vpop.xlane.xlu0 %375 }
 0x211   : > { %v449_v33 = vrot.slane %v376_v61, %v2386_v12  ;;  %v534_v37 = vadd.f32 %v445_v26, %v337_v60 }
 0x214   : > { %v379_v39 = vpop.xlane.xlu1 %378  ;;  %v406_v62 = vpop.xlane.xlu0 %405 }
 0x215   : > { %v544_v19 = vrot.slane %v406_v62, %v2389_v13  ;;  %v453_v29 = vrot.slane %v379_v39, %v2386_v12 }
 0x217   : > { %v573_v31 = vadd.f32 %v544_v19, %v533_v25 }
 0x218   : > { %v409_v63 = vpop.xlane.xlu1 %408  ;;  %v382_v0 = vpop.xlane.xlu0 %381 }
 0x219   : > { %v548_v32 = vrot.slane %v409_v63, %v2389_v13  ;;  %v585_v41 = vadd.f32 %v2398_v34, %v573_v31  ;;  %v457_v30 = vrot.slane %v382_v0, %v2386_v12 }
 0x21b   : > { %v574_v24 = vadd.f32 %v548_v32, %v534_v37  ;;  %vm593_vm2 = vcmp.gt.f32.partialorder %v585_v41, 0.0  ;;  %v601_v60 = vmul.f32 0.01, %v585_v41 }
 0x21c   : > { %v340_v1 = vpop.xlane.xlu1 %339  ;;  %v343_v2 = vpop.xlane.xlu0 %342 }
 0x21d   : > { %v535_v40 = vadd.f32 %v449_v33, %v340_v1  ;;  %v586_v47 = vadd.f32 %v2398_v34, %v574_v24  ;;  %v536_v51 = vadd.f32 %v453_v29, %v343_v2  ;;  %v2440_v32 = vsel %vm593_vm2, %v585_v41, %v601_v60 }
 0x21e   : > { %v618_v29 = vsel %vm617_vm5, %v2440_v32, -inf  ;;  %vm473_vm2 = vcmask 1043459  }
 0x21f   : > { %vm594_vm3 = vcmp.gt.f32.partialorder %v586_v47, 0.0 }
 0x220   : > { %v385_v3 = vpop.xlane.xlu1 %384  ;;  %v412_v4 = vpop.xlane.xlu0 %411 }
 0x221   : > { %v552_v35 = vrot.slane %v412_v4, %v2389_v13  ;;  %v461_v54 = vrot.slane %v385_v3, %v2386_v12 }
 0x223   : > { %v575_v42 = vadd.f32 %v552_v35, %v535_v40 }
 0x224   : > { %v415_v6 = vpop.xlane.xlu1 %414  ;;  %v346_v8 = vpop.xlane.xlu0 %345 }
 0x225   : > { %v556_v46 = vrot.slane %v415_v6, %v2389_v13  ;;  %v587_v55 = vadd.f32 %v2398_v34, %v575_v42  ;;  %v537_v56 = vadd.f32 %v457_v30, %v346_v8 }
 0x227   : > { %v576_v61 = vadd.f32 %v556_v46, %v536_v51  ;;  %vm595_vm4 = vcmp.gt.f32.partialorder %v587_v55, 0.0  ;;  %v603_v19 = vmul.f32 0.01, %v587_v55 }
 0x228   : > { %v388_v10 = vpop.xlane.xlu1 %387  ;;  %v418_v11 = vpop.xlane.xlu0 %417 }
 0x229   : > { %v560_v38 = vrot.slane %v418_v11, %v2389_v13  ;;  %v465_v0 = vrot.slane %v388_v10, %v2386_v12  ;;  %v602_v11 = vmul.f32 0.01, %v586_v47 }
 0x22b   : > { %v577_v1 = vadd.f32 %v560_v38, %v537_v56  ;;  %v2445_v35 = vsel %vm594_vm3, %v586_v47, %v602_v11  ;;  %vm475_vm3 = vcmask 1044484  }
 0x22c   : > { %v349_v15 = vpop.xlane.xlu1 %348  ;;  %v2391_v16 = vpop.xlane.xlu0 %390  ;;  %v621_v46 = vsel %vm617_vm5, %v2445_v35, -inf }
 0x22d   : > { %v538_v6 = vadd.f32 %v461_v54, %v349_v15  ;;  %v469_v56 = vrot.slane %v2391_v16, %v2386_v12 }
 0x230   : > { %v421_v22 = vpop.xlane.xlu1 %420  ;;  %v352_v23 = vpop.xlane.xlu0 %351 }
 0x231   : > { %v539_v8 = vadd.f32 %v465_v0, %v352_v23 }
 0x234   : > { %v424_v28 = vpop.xlane.xlu1 %423  ;;  %v2401_v36 = vpop.xlane.xlu0 %354 }
 0x235   : > { %v568_v2 = vrot.slane %v424_v28, %v2389_v13  ;;  %v2448_v28 = vsel %vm595_vm4, %v587_v55, %v603_v19  ;;  %vm477_vm4 = vcmask 1045509  }
 0x237   : > { %v579_v26 = vadd.f32 %v568_v2, %v539_v8 }
 0x238   : > { %v2404_v44 = vpop.xlane.xlu1 %426  ;;  %v708_v45 = vpop.xlane.xlu0 %707 }
 0x239   : > { %v730_v50 = vmul.f32 0.03125, %v708_v45  ;;  %v591_v37 = vadd.f32 %v2398_v34, %v579_v26 }
 0x23b   : > { %v2412_v53 = vsub.f32 %v2255_v27, %v730_v50  ;;  %v564_v27 = vrot.slane %v421_v22, %v2389_v13  ;;  %v589_v22 = vadd.f32 %v2398_v34, %v577_v1  ;;  %v624_v50 = vsel %vm617_vm5, %v2448_v28, -inf }
 0x23c   : > { %v711_v57 = vpop.xlane.xlu1 %710  ;;  %v714_v58 = vpop.xlane.xlu0 %713  ;;  %v607_v51 = vmul.f32 0.01, %v591_v37  ;;  %vm599_vm9 = vcmp.gt.f32.partialorder %v591_v37, 0.0 }
 0x23d   : > { %v731_v39 = vmul.f32 0.03125, %v711_v57  ;;  %v732_v62 = vmul.f32 0.03125, %v714_v58  ;;  %v746_v63 = vmul.f32 %v2412_v53, %v2412_v53  ;;  %v578_v25 = vadd.f32 %v564_v27, %v538_v6 }
 0x23e   : > { %v605_v45 = vmul.f32 0.01, %v589_v22  ;;  %vm597_vm7 = vcmp.gt.f32.partialorder %v589_v22, 0.0  ;;  %v572_v57 = vrot.slane %v2404_v44, %v2389_v13  ;;  %v615_v0 = vsel %vm599_vm9, %v591_v37, %v607_v51 }
 0x23f   : > { %v2422_v3 = vsub.f32 %v2269_v21, %v731_v39  ;;  %v2425_v4 = vsub.f32 %v2273_v43, %v732_v62  ;;  %v754_v5 = vsel %vm190_vm0, %v746_v63, 0.0  ;;  %v588_v43 = vadd.f32 %v2398_v34, %v576_v61 }
 0x240   : > { %v717_v48 = vpop.xlane.xlu1 %716  ;;  %755 = vadd.xlane.f32.xlu0 %v754_v5  ;;  %v720_v40 = vpop.xlane.xlu0 %719  ;;  %v2461_v38 = vsel %vm597_vm7, %v589_v22, %v605_v45  ;;  %v540_v39 = vadd.f32 %v469_v56, %v2401_v36  ;;  %v636_v36 = vsel %vm617_vm5, %v615_v0, -inf  ;;  %vm479_vm9 = vcmask 1046534  }
 0x241   : > { %v733_v10 = vmul.f32 0.03125, %v717_v48  ;;  %v747_v18 = vmul.f32 %v2422_v3, %v2422_v3  ;;  %v748_v21 = vmul.f32 %v2425_v4, %v2425_v4  ;;  %v604_v42 = vmul.f32 0.01, %v588_v43 }
 0x242   : > { %vm596_vm6 = vcmp.gt.f32.partialorder %v588_v43, 0.0  ;;  %v734_v54 = vmul.f32 0.03125, %v720_v40  ;;  %v630_v62 = vsel %vm617_vm5, %v2461_v38, -inf  ;;  %v580_v27 = vadd.f32 %v572_v57, %v540_v39 }
 0x243   : > { %v2435_v15 = vsub.f32 %v2287_v52, %v733_v10  ;;  %v757_v23 = vsel %vm190_vm0, %v747_v18, 0.0  ;;  %v760_v31 = vsel %vm190_vm0, %v748_v21, 0.0  ;;  %v590_v52 = vadd.f32 %v2398_v34, %v578_v25 }
 0x244   : > { %758 = vadd.xlane.f32.xlu1 %v757_v23  ;;  %761 = vadd.xlane.f32.xlu0 %v760_v31  ;;  %v723_v24 = vpop.xlane.xlu1 %722  ;;  %v2459_v30 = vsel %vm596_vm6, %v588_v43, %v604_v42  ;;  %v726_v58 = vpop.xlane.xlu0 %725  ;;  %v2473_v1 = vsub.f32 %v2298_v59, %v734_v54  ;;  %v592_v8 = vadd.f32 %v2398_v34, %v580_v27 }
 0x245   : > { %v749_v33 = vmul.f32 %v2435_v15, %v2435_v15  ;;  %v606_v47 = vmul.f32 0.01, %v590_v52  ;;  %v735_v55 = vmul.f32 0.03125, %v723_v24  ;;  %vm598_vm8 = vcmp.gt.f32.partialorder %v590_v52, 0.0 }
 0x246   : > { %v627_v61 = vsel %vm617_vm5, %v2459_v30, -inf  ;;  %v736_v16 = vmul.f32 0.03125, %v726_v58  ;;  %v608_v10 = vmul.f32 0.01, %v592_v8  ;;  %vm600_vm10 = vcmp.gt.f32.partialorder %v592_v8, 0.0 }
 0x247   : > { %v763_v41 = vsel %vm190_vm0, %v749_v33, 0.0  ;;  %v614_v63 = vsel %vm598_vm8, %v590_v52, %v606_v47  ;;  %v2476_v12 = vsub.f32 %v2315_v7, %v735_v55  ;;  %v750_v7 = vmul.f32 %v2473_v1, %v2473_v1 }
 0x248   : > { %764 = vadd.xlane.f32.xlu1 %v763_v41  ;;  %619 = vmax.xlane.f32.xlu0 %v618_v29  ;;  %v729_v60 = vpop.xlane.xlu1 %728  ;;  %v633_v2 = vsel %vm617_vm5, %v614_v63, -inf  ;;  %v2481_v5 = vsub.f32 %v2332_v49, %v736_v16  ;;  %v616_v21 = vsel %vm600_vm10, %v592_v8, %v608_v10  ;;  %vm481_vm10 = vcmask 1047559  }
 0x249   : > { %v737_v44 = vmul.f32 0.03125, %v729_v60  ;;  %v751_v59 = vmul.f32 %v2476_v12, %v2476_v12  ;;  %v766_v11 = vsel %vm190_vm0, %v750_v7, 0.0  ;;  %v639_v19 = vsel %vm617_vm5, %v616_v21, -inf }
 0x24b   : > { %v2484_v6 = vsub.f32 %v2342_v20, %v737_v44  ;;  %v769_v48 = vsel %vm190_vm0, %v751_v59, 0.0  ;;  %v752_v20 = vmul.f32 %v2481_v5, %v2481_v5 }
 0x24c   : > { %622 = vmax.xlane.f32.xlu1 %v621_v46  ;;  %625 = vmax.xlane.f32.xlu0 %v624_v50 }
 0x24d   : > { %v753_v49 = vmul.f32 %v2484_v6, %v2484_v6  ;;  %v772_v34 = vsel %vm190_vm0, %v752_v20, 0.0  ;;  %v2038_v20 = vmov 0  }
 0x24e   : > { %1812 = vset.pattern.permute.xlu0 %v2038_v20  ;;  %1813 = vset.pattern.permute.xlu1 %v2038_v20 }
 0x24f   : > { %v775_v18 = vsel %vm190_vm0, %v753_v49, 0.0 }
 0x250   : > { %628 = vmax.xlane.f32.xlu1 %v627_v61  ;;  %631 = vmax.xlane.f32.xlu0 %v630_v62 }
 0x254   : > { %634 = vmax.xlane.f32.xlu1 %v633_v2  ;;  %637 = vmax.xlane.f32.xlu0 %v636_v36 }
 0x258   : > { %770 = vadd.xlane.f32.xlu1 %v769_v48  ;;  %767 = vadd.xlane.f32.xlu0 %v766_v11 }
 0x25c   : > { %776 = vadd.xlane.f32.xlu1 %v775_v18  ;;  %773 = vadd.xlane.f32.xlu0 %v772_v34 }
 0x260   : > { %640 = vmax.xlane.f32.xlu1 %v639_v19 }
 0x2c9   : > { %v2500_v43 = vpop.xlane.xlu0 %755 }
 0x2cd   : > { %v2502_v22 = vpop.xlane.xlu1 %758  ;;  %v2504_v25 = vpop.xlane.xlu0 %761 }
 0x2d1   : > { %v2506_v26 = vpop.xlane.xlu1 %764  ;;  %v620_v23 = vpop.xlane.xlu0 %619 }
 0x2d2   : > { %v642_v31 = vsub.f32 %v2440_v32, %v620_v23 }
 0x2d4   : > { %v650_v33 = vmul.f32 1.442695, %v642_v31 }
 0x2d5   : > { %v623_v52 = vpop.xlane.xlu1 %622  ;;  %v626_v37 = vpop.xlane.xlu0 %625 }
 0x2d6   : > { %v643_v40 = vsub.f32 %v2445_v35, %v623_v52  ;;  %v644_v24 = vsub.f32 %v2448_v28, %v626_v37  ;;  %1860 = vpow2.f32 %v650_v33 }
 0x2d8   : > { %v652_v42 = vmul.f32 1.442695, %v643_v40  ;;  %v654_v45 = vmul.f32 1.442695, %v644_v24 }
 0x2d9   : > { %v629_v41 = vpop.xlane.xlu1 %628  ;;  %v632_v29 = vpop.xlane.xlu0 %631 }
 0x2da   : > { %1862 = vpow2.f32 %v652_v42  ;;  %v645_v46 = vsub.f32 %v2459_v30, %v629_v41  ;;  %v646_v50 = vsub.f32 %v2461_v38, %v632_v29  ;;  %v2039_v41 = vmov 1  }
 0x2db   : > { %1864 = vpow2.f32 %v654_v45 }
 0x2dc   : > { %v656_v47 = vmul.f32 1.442695, %v645_v46  ;;  %v658_v32 = vmul.f32 1.442695, %v646_v50 }
 0x2dd   : > { %v635_v51 = vpop.xlane.xlu1 %634  ;;  %v638_v54 = vpop.xlane.xlu0 %637 }
 0x2de   : > { %1866 = vpow2.f32 %v656_v47  ;;  %v647_v55 = vsub.f32 %v614_v63, %v635_v51  ;;  %v648_v35 = vsub.f32 %v615_v0, %v638_v54 }
 0x2df   : > { %1868 = vpow2.f32 %v658_v32 }
 0x2e0   : > { %v660_v28 = vmul.f32 1.442695, %v647_v55  ;;  %v662_v56 = vmul.f32 1.442695, %v648_v35 }
 0x2e1   : > { %v2513_v57 = vpop.xlane.xlu1 %770  ;;  %v2525_v10 = vpop.xlane.xlu0 %767 }
 0x2e2   : > { %1870 = vpow2.f32 %v660_v28 }
 0x2e3   : > { %1872 = vpow2.f32 %v662_v56  ;;  %v1861_v58 = vpop.eup %1860  ;;  %v2040_v56 = vmov 2  }
 0x2e4   : > { %v666_v30 = vsel %vm617_vm5, %v1861_v58, 0.0 }
 0x2e5   : > { %v2515_v60 = vpop.xlane.xlu1 %776  ;;  %667 = vadd.xlane.f32.xlu0 %v666_v30  ;;  %v2527_v18 = vpop.xlane.xlu0 %773 }
 0x2e7   : > { %v1863_v38 = vpop.eup %1862 }
 0x2e8   : > { %v1865_v61 = vpop.eup %1864  ;;  %v669_v39 = vsel %vm617_vm5, %v1863_v38, 0.0 }
 0x2e9   : > { %670 = vadd.xlane.f32.xlu1 %v669_v39  ;;  %v641_v62 = vpop.xlane.xlu1 %640  ;;  %v672_v63 = vsel %vm617_vm5, %v1865_v61, 0.0  ;;  %v2043_v39 = vmov 5  }
 0x2ea   : > { %v649_v0 = vsub.f32 %v616_v21, %v641_v62  ;;  %673 = vadd.xlane.f32.xlu0 %v672_v63  ;;  %v2044_v62 = vmov 7   ;;  %v2045_v63 = vmov 6  }
 0x2eb   : > { %v1867_v16 = vpop.eup %1866 }
 0x2ec   : > { %v1869_v44 = vpop.eup %1868  ;;  %v664_v27 = vmul.f32 1.442695, %v649_v0  ;;  %v675_v2 = vsel %vm617_vm5, %v1867_v16, 0.0  ;;  %v778_v0 = vmul.f32 0.03125, %v2500_v43  ;;  %v782_v43 = vmul.f32 0.03125, %v2525_v10 }
 0x2ed   : > { %676 = vadd.xlane.f32.xlu1 %v675_v2  ;;  %v678_v36 = vsel %vm617_vm5, %v1869_v44, 0.0  ;;  %v780_v2 = vmul.f32 0.03125, %v2504_v25 }
 0x2ee   : > { %1874 = vpow2.f32 %v664_v27  ;;  %679 = vadd.xlane.f32.xlu0 %v678_v36 }
 0x2ef   : > { %v1871_v59 = vpop.eup %1870  ;;  %v788_v36 = vadd.f32 1e-05, %v780_v2 }
 0x2f0   : > { %v1873_v7 = vpop.eup %1872  ;;  %v681_v8 = vsel %vm617_vm5, %v1871_v59, 0.0 }
 0x2f1   : > { %682 = vadd.xlane.f32.xlu1 %v681_v8  ;;  %v684_v48 = vsel %vm617_vm5, %v1873_v7, 0.0 }
 0x2f2   : > { %685 = vadd.xlane.f32.xlu0 %v684_v48 }
 0x2fb   : > { %v1875_v11 = vpop.eup %1874 }
 0x2fc   : > { %v687_v49 = vsel %vm617_vm5, %v1875_v11, 0.0 }
 0x2fd   : > { %688 = vadd.xlane.f32.xlu1 %v687_v49 }
 0x36e   : > { %v668_v34 = vpop.xlane.xlu0 %667 }
 0x36f   : > { %1876 = vrcp.f32 %v668_v34 }
 0x372   : > { %v671_v21 = vpop.xlane.xlu1 %670 }
 0x373   : > { %1878 = vrcp.f32 %v671_v21  ;;  %v674_v19 = vpop.xlane.xlu0 %673 }
 0x374   : > { %1880 = vrcp.f32 %v674_v19 }
 0x376   : > { %v677_v23 = vpop.xlane.xlu1 %676 }
 0x377   : > { %v680_v31 = vpop.xlane.xlu0 %679 }
 0x378   : > { %1882 = vrcp.f32 %v680_v31 }
 0x379   : > { %1884 = vrcp.f32 %v677_v23 }
 0x37a   : > { %v683_v40 = vpop.xlane.xlu1 %682 }
 0x37b   : > { %v686_v33 = vpop.xlane.xlu0 %685 }
 0x37c   : > { %1886 = vrcp.f32 %v686_v33  ;;  %v1877_v52 = vpop.eup %1876 }
 0x37d   : > { %v2529_v37 = vmul.f32 %v1877_v52, %v1861_v58  ;;  %1888 = vrcp.f32 %v683_v40  ;;  %v781_v52 = vmul.f32 0.03125, %v2506_v26 }
 0x37f   : > { %828 = vperm.xlu0 %1812, %v2529_v37  }
 0x380   : > { %v1879_v24 = vpop.eup %1878 }
 0x381   : > { %v2532_v42 = vmul.f32 %v1879_v24, %v1863_v38  ;;  %v1881_v45 = vpop.eup %1880  ;;  %v2041_v38 = vmov 3  }
 0x382   : > { %v2535_v46 = vmul.f32 %v1881_v45, %v1865_v61  ;;  %v2042_v61 = vmov 4  }
 0x383   : > { %833 = vperm.xlu1 %1813, %v2532_v42   ;;  %1815 = vset.pattern.permute.xlu0 %v2039_v41 }
 0x384   : > { %911 = vperm.xlu0 %1815, %v2532_v42  }
 0x385   : > { %v1883_v29 = vpop.eup %1882 }
 0x386   : > { %v1885_v50 = vpop.eup %1884  ;;  %v2538_v47 = vmul.f32 %v1883_v29, %v1869_v44  ;;  %v689_v32 = vpop.xlane.xlu1 %688  ;;  %v786_v44 = vadd.f32 1e-05, %v778_v0  ;;  %v789_v29 = vadd.f32 1e-05, %v781_v52 }
 0x387   : > { %838 = vperm.xlu1 %1813, %v2535_v46   ;;  %v2541_v54 = vmul.f32 %v1885_v50, %v1867_v16  ;;  %1890 = vrcp.f32 %v689_v32  ;;  %v779_v16 = vmul.f32 0.03125, %v2502_v22  ;;  %v790_v22 = vadd.f32 1e-05, %v782_v43 }
 0x388   : > { %923 = vperm.xlu0 %1815, %v2538_v47   ;;  %1892 = vrsqrt.f32 %v786_v44  ;;  %v783_v32 = vmul.f32 0.03125, %v2513_v57 }
 0x389   : > { %v1887_v51 = vpop.eup %1886  ;;  %v787_v27 = vadd.f32 1e-05, %v779_v16 }
 0x38a   : > { %v2544_v55 = vmul.f32 %v1887_v51, %v1873_v7  ;;  %v1889_v35 = vpop.eup %1888  ;;  %v791_v0 = vadd.f32 1e-05, %v783_v32 }
 0x38b   : > { %843 = vperm.xlu1 %1813, %v2541_v54   ;;  %v2549_v28 = vmul.f32 %v1889_v35, %v1871_v59  ;;  %1894 = vrsqrt.f32 %v787_v27 }
 0x38c   : > { %931 = vperm.xlu0 %1815, %v2544_v55   ;;  %1896 = vrsqrt.f32 %v788_v36 }
 0x38d   : > { %1898 = vrsqrt.f32 %v790_v22  ;;  %v784_v22 = vmul.f32 0.03125, %v2527_v18 }
 0x38e   : > { %1900 = vrsqrt.f32 %v789_v29 }
 0x38f   : > { %848 = vperm.xlu1 %1813, %v2538_v47   ;;  %1902 = vrsqrt.f32 %v791_v0 }
 0x390   : > { %1816 = vset.pattern.permute.xlu0 %v2040_v56 }
 0x391   : > { %987 = vperm.xlu0 %1816, %v2529_v37  }
 0x393   : > { %853 = vperm.xlu1 %1813, %v2549_v28  }
 0x394   : > { %v1891_v58 = vpop.eup %1890 }
 0x395   : > { %999 = vperm.xlu0 %1816, %v2541_v54   ;;  %v2555_v30 = vmul.f32 %v1891_v58, %v1875_v11  ;;  %v1893_v25 = vpop.eup %1892 }
 0x396   : > { %v802_v7 = vmul.f32 %v1893_v25, %v2412_v53  ;;  %v2620_v53 = vsub.s32 0, %v2383_v9 }
 0x397   : > { %858 = vperm.xlu1 %1813, %v2544_v55  }
 0x398   : > { %v1895_v59 = vpop.eup %1894  ;;  %v810_v11 = vmul.f32 %v2245_v14, %v802_v7 }
 0x399   : > { %1007 = vperm.xlu0 %1816, %v2549_v28   ;;  %v803_v8 = vmul.f32 %v1895_v59, %v2422_v3  ;;  %v1897_v48 = vpop.eup %1896 }
 0x39a   : > { %v1899_v49 = vpop.eup %1898  ;;  %v804_v10 = vmul.f32 %v1897_v48, %v2425_v4  ;;  %v2617_v34 = vadd.f32 %v2248_v17, %v810_v11  ;;  %v2674_v48 = vsub.s32 2, %v2383_v9  ;;  %v1908_v11 = vld [vmem:[#allocation5] ss:$0 sm:$0xff] }
 0x39b   : > { %863 = vperm.xlu1 %1813, %v2555_v30   ;;  %v811_v20 = vmul.f32 %v2245_v14, %v803_v8  ;;  %v806_v3 = vmul.f32 %v1899_v49, %v2473_v1  ;;  %v792_v8 = vadd.f32 1e-05, %v784_v22 }
 0x39c   : > { %v812_v19 = vmul.f32 %v2245_v14, %v804_v10  ;;  %v869_v4 = vrot.slane %v2617_v34, %v2620_v53 }
 0x39d   : > { %1015 = vperm.xlu0 %1816, %v2555_v30   ;;  %v2626_v21 = vadd.f32 %v2248_v17, %v811_v20  ;;  %v814_v23 = vmul.f32 %v2245_v14, %v806_v3  ;;  %v1021_v3 = vrot.slane %v2617_v34, %v2674_v48 }
 0x39e   : > { %v2636_v1 = vadd.f32 %v2248_v17, %v812_v19 }
 0x39f   : > { %1814 = vset.pattern.permute.xlu1 %v2039_v41  ;;  %v2642_v24 = vadd.f32 %v2248_v17, %v814_v23  ;;  %v945_v14 = vrot.slane %v2626_v21, %v2389_v13 }
 0x3a0   : > { %907 = vperm.xlu1 %1814, %v2529_v37   ;;  %v877_v26 = vrot.slane %v2636_v1, %v2620_v53 }
 0x3a1   : > { %1819 = vset.pattern.permute.xlu0 %v2041_v38  ;;  %v885_v57 = vrot.slane %v2642_v24, %v2620_v53 }
 0x3a2   : > { %1071 = vperm.xlu0 %1819, %v2532_v42  }
 0x3a4   : > { %915 = vperm.xlu1 %1814, %v2535_v46  }
 0x3a6   : > { %1083 = vperm.xlu0 %1819, %v2538_v47  }
 0x3a8   : > { %919 = vperm.xlu1 %1814, %v2541_v54  }
 0x3aa   : > { %1820 = vset.pattern.permute.xlu0 %v2042_v61 }
 0x3ab   : > { %1147 = vperm.xlu0 %1820, %v2529_v37  }
 0x3ac   : > { %927 = vperm.xlu1 %1814, %v2549_v28  }
 0x3af   : > { %1159 = vperm.xlu0 %1820, %v2541_v54  }
 0x3b0   : > { %935 = vperm.xlu1 %1814, %v2555_v30  }
 0x3b3   : > { %1823 = vset.pattern.permute.xlu0 %v2043_v39 }
 0x3b4   : > { %1817 = vset.pattern.permute.xlu1 %v2040_v56  ;;  %1231 = vperm.xlu0 %1823, %v2532_v42   ;;  %v957_v56 = vrot.slane %v2642_v24, %v2389_v13 }
 0x3b5   : > { %991 = vperm.xlu1 %1817, %v2532_v42  }
 0x3b8   : > { %1826 = vset.pattern.permute.xlu0 %v2041_v38 }
 0x3b9   : > { %995 = vperm.xlu1 %1817, %v2535_v46   ;;  %1095 = vperm.xlu0 %1826, %v2555_v30  }
 0x3bd   : > { %1003 = vperm.xlu1 %1817, %v2538_v47   ;;  %1828 = vset.pattern.permute.xlu0 %v2043_v39 }
 0x3be   : > { %1239 = vperm.xlu0 %1828, %v2541_v54  }
 0x3c1   : > { %1011 = vperm.xlu1 %1817, %v2544_v55  }
 0x3c2   : > { %1830 = vset.pattern.permute.xlu0 %v2042_v61 }
 0x3c3   : > { %1171 = vperm.xlu0 %1830, %v2544_v55  }
 0x3c5   : > { %1818 = vset.pattern.permute.xlu1 %v2041_v38 }
 0x3c6   : > { %1067 = vperm.xlu1 %1818, %v2529_v37  }
 0x3c7   : > { %1833 = vset.pattern.permute.xlu0 %v2043_v39 }
 0x3c8   : > { %1247 = vperm.xlu0 %1833, %v2549_v28  }
 0x3ca   : > { %1075 = vperm.xlu1 %1818, %v2535_v46  }
 0x3cc   : > { %1835 = vset.pattern.permute.xlu0 %v2044_v62 }
 0x3cd   : > { %1387 = vperm.xlu0 %1835, %v2529_v37  }
 0x3ce   : > { %1079 = vperm.xlu1 %1818, %v2541_v54  }
 0x3d1   : > { %1838 = vset.pattern.permute.xlu0 %v2045_v63 }
 0x3d2   : > { %1087 = vperm.xlu1 %1818, %v2549_v28   ;;  %1323 = vperm.xlu0 %1838, %v2538_v47  }
 0x3d6   : > { %1821 = vset.pattern.permute.xlu1 %v2042_v61  ;;  %1840 = vset.pattern.permute.xlu0 %v2044_v62 }
 0x3d7   : > { %1151 = vperm.xlu1 %1821, %v2532_v42   ;;  %1395 = vperm.xlu0 %1840, %v2535_v46  }
 0x3db   : > { %1155 = vperm.xlu1 %1821, %v2535_v46   ;;  %1403 = vperm.xlu0 %1840, %v2538_v47  }
 0x3df   : > { %1822 = vset.pattern.permute.xlu1 %v2043_v39  ;;  %1407 = vperm.xlu0 %1840, %v2549_v28  }
 0x3e0   : > { %1227 = vperm.xlu1 %1822, %v2529_v37  }
 0x3e3   : > { %1415 = vperm.xlu0 %1840, %v2555_v30  }
 0x3e4   : > { %1824 = vset.pattern.permute.xlu1 %v2041_v38 }
 0x3e5   : > { %1091 = vperm.xlu1 %1824, %v2544_v55  }
 0x3e9   : > { %1825 = vset.pattern.permute.xlu1 %v2042_v61 }
 0x3ea   : > { %1163 = vperm.xlu1 %1825, %v2538_v47  }
 0x3ee   : > { %1167 = vperm.xlu1 %1825, %v2549_v28  }
 0x3f2   : > { %1827 = vset.pattern.permute.xlu1 %v2043_v39 }
 0x3f3   : > { %1235 = vperm.xlu1 %1827, %v2535_v46  }
 0x3f7   : > { %1829 = vset.pattern.permute.xlu1 %v2045_v63 }
 0x3f8   : > { %1307 = vperm.xlu1 %1829, %v2529_v37   ;;  %v873_v37 = vrot.slane %v2626_v21, %v2620_v53 }
 0x3fa   : > { %v829_v31 = vpop.permute.xlu0 %828 }
 0x3fb   : > { %v2632_v33 = vmul.f32 %v869_v4, %v829_v31  ;;  %v1909_v4 = vld [vmem:[#allocation5 + $0x1] ss:$0 sm:$0xff] }
 0x3fc   : > { %1311 = vperm.xlu1 %1829, %v2532_v42  }
 0x3fe   : > { %v834_v40 = vpop.permute.xlu1 %833 }
 0x3ff   : > { %v899_v45 = vmul.f32 %v873_v37, %v834_v40  ;;  %v912_v41 = vpop.permute.xlu0 %911 }
 0x400   : > { %1831 = vset.pattern.permute.xlu1 %v2043_v39  ;;  %v971_v50 = vmul.f32 %v945_v14, %v912_v41 }
 0x401   : > { %1243 = vperm.xlu1 %1831, %v2538_v47   ;;  %v785_v47 = vmul.f32 0.03125, %v2515_v60  ;;  %v1901_v60 = vpop.eup %1900 }
 0x402   : > { %v839_v51 = vpop.permute.xlu1 %838  ;;  %v2651_v35 = vadd.f32 %v971_v50, %v899_v45  ;;  %v805_v59 = vmul.f32 %v1901_v60, %v2435_v15  ;;  %v1903_v7 = vpop.eup %1902 }
 0x403   : > { %v900_v17 = vmul.f32 %v877_v26, %v839_v51  ;;  %v924_v58 = vpop.permute.xlu0 %923  ;;  %v793_v44 = vadd.f32 1e-05, %v785_v47  ;;  %v807_v18 = vmul.f32 %v1903_v7, %v2476_v12 }
 0x404   : > { %v974_v38 = vmul.f32 %v957_v56, %v924_v58  ;;  %v813_v49 = vmul.f32 %v1908_v11, %v805_v59 }
 0x405   : > { %1832 = vset.pattern.permute.xlu1 %v2042_v61  ;;  %1904 = vrsqrt.f32 %v793_v44  ;;  %v815_v12 = vmul.f32 %v1908_v11, %v807_v18  ;;  %v1025_v18 = vrot.slane %v2626_v21, %v2674_v48 }
 0x406   : > { %v844_v16 = vpop.permute.xlu1 %843  ;;  %1175 = vperm.xlu1 %1832, %v2555_v30   ;;  %1906 = vrsqrt.f32 %v792_v8  ;;  %v2683_v23 = vadd.f32 %v1909_v4, %v813_v49 }
 0x407   : > { %v2669_v25 = vpop.permute.xlu0 %931  ;;  %v2697_v50 = vadd.f32 %v1909_v4, %v815_v12 }
 0x408   : > { %v881_v29 = vrot.slane %v2683_v23, %v2620_v53 }
 0x40a   : > { %v849_v27 = vpop.permute.xlu1 %848  ;;  %1834 = vset.pattern.permute.xlu1 %v2045_v63  ;;  %v901_v51 = vmul.f32 %v881_v29, %v844_v16 }
 0x40b   : > { %v902_v2 = vmul.f32 %v885_v57, %v849_v27  ;;  %1315 = vperm.xlu1 %1834, %v2535_v46  }
 0x40c   : > { %v988_v20 = vpop.permute.xlu0 %987 }
 0x40d   : > { %v2662_v43 = vadd.f32 %v974_v38, %v902_v2  ;;  %v1050_v52 = vmul.f32 %v1021_v3, %v988_v20  ;;  %v889_v38 = vrot.slane %v2697_v50, %v2620_v53 }
 0x40e   : > { %v854_v61 = vpop.permute.xlu1 %853 }
 0x40f   : > { %1319 = vperm.xlu1 %1834, %v2541_v54   ;;  %v903_v16 = vmul.f32 %v889_v38, %v854_v61 }
 0x410   : > { %v2690_v45 = vpop.permute.xlu0 %999 }
 0x412   : > { %v2665_v36 = vpop.permute.xlu1 %858  ;;  %v1905_v10 = vpop.eup %1904 }
 0x413   : > { %1836 = vset.pattern.permute.xlu1 %v2044_v62  ;;  %v809_v31 = vmul.f32 %v1905_v10, %v2484_v6  ;;  %v953_v6 = vrot.slane %v2683_v23, %v2389_v13  ;;  %v1907_v57 = vpop.eup %1906 }
 0x414   : > { %1391 = vperm.xlu1 %1836, %v2532_v42   ;;  %v941_v42 = vrot.slane %v2617_v34, %v2389_v13  ;;  %v2706_v0 = vpop.permute.xlu0 %1007  ;;  %v808_v22 = vmul.f32 %v1907_v57, %v2481_v5  ;;  %v1033_v57 = vrot.slane %v2683_v23, %v2674_v48 }
 0x415   : > { %v817_v26 = vmul.f32 %v1908_v11, %v809_v31 }
 0x416   : > { %v864_v46 = vpop.permute.xlu1 %863  ;;  %v816_v49 = vmul.f32 %v1908_v11, %v808_v22 }
 0x417   : > { %v2702_v58 = vadd.f32 %v1909_v4, %v817_v26 }
 0x418   : > { %1837 = vset.pattern.permute.xlu1 %v2043_v39  ;;  %v949_v39 = vrot.slane %v2636_v1, %v2389_v13  ;;  %v2722_v8 = vpop.permute.xlu0 %1015  ;;  %v2730_v10 = vadd.f32 %v1909_v4, %v816_v49  ;;  %v1037_v4 = vrot.slane %v2642_v24, %v2674_v48 }
 0x419   : > { %1251 = vperm.xlu1 %1837, %v2544_v55   ;;  %v897_v27 = vrot.slane %v2702_v58, %v2620_v53  ;;  %v969_v60 = vrot.slane %v2702_v58, %v2389_v13 }
 0x41a   : > { %v893_v11 = vrot.slane %v2730_v10, %v2620_v53  ;;  %v965_v12 = vrot.slane %v2730_v10, %v2389_v13 }
 0x41b   : > { %v908_v15 = vpop.permute.xlu1 %907  ;;  %v905_v7 = vmul.f32 %v897_v27, %v864_v46  ;;  %v1029_v46 = vrot.slane %v2636_v1, %v2674_v48  ;;  %v1053_v27 = vmul.f32 %v1033_v57, %v2690_v45 }
 0x41c   : > { %v970_v19 = vmul.f32 %v941_v42, %v908_v15  ;;  %v976_v53 = vmul.f32 %v965_v12, %v2669_v25 }
 0x41d   : > { %1255 = vperm.xlu1 %1837, %v2555_v30   ;;  %v1072_v5 = vpop.permute.xlu0 %1071 }
 0x41e   : > { %v978_v37 = vadd.f32 %v970_v19, %v2632_v33 }
 0x41f   : > { %v916_v40 = vpop.permute.xlu1 %915 }
 0x420   : > { %v972_v14 = vmul.f32 %v949_v39, %v916_v40  ;;  %v2692_v41 = vadd.f32 %v1050_v52, %v978_v37  ;;  %v1045_v40 = vrot.slane %v2730_v10, %v2674_v48 }
 0x421   : > { %1839 = vset.pattern.permute.xlu1 %v2045_v63 }
 0x422   : > { %v980_v32 = vadd.f32 %v972_v14, %v900_v17  ;;  %1327 = vperm.xlu1 %1839, %v2549_v28   ;;  %v961_v28 = vrot.slane %v2697_v50, %v2389_v13  ;;  %v2754_v13 = vsub.s32 4, %v2383_v9 }
 0x423   : > { %v920_v33 = vpop.permute.xlu1 %919 }
 0x424   : > { %v973_v56 = vmul.f32 %v953_v6, %v920_v33 }
 0x426   : > { %v2708_v47 = vadd.f32 %v973_v56, %v901_v51  ;;  %1841 = vset.pattern.permute.xlu1 %v2044_v62 }
 0x427   : > { %1399 = vperm.xlu1 %1841, %v2541_v54   ;;  %v928_v17 = vpop.permute.xlu1 %927 }
 0x428   : > { %v975_v44 = vmul.f32 %v961_v28, %v928_v17 }
 0x42a   : > { %v2716_v2 = vadd.f32 %v975_v44, %v903_v16 }
 0x42b   : > { %1842 = vset.pattern.permute.xlu1 %v2045_v63  ;;  %v936_v59 = vpop.permute.xlu1 %935 }
 0x42c   : > { %v977_v54 = vmul.f32 %v969_v60, %v936_v59  ;;  %1331 = vperm.xlu1 %1842, %v2544_v55  }
 0x42e   : > { %v2725_v61 = vadd.f32 %v977_v54, %v905_v7  ;;  %v1061_v54 = vadd.f32 %v1053_v27, %v2708_v47 }
 0x430   : > { %1335 = vperm.xlu1 %1842, %v2555_v30   ;;  %v992_v20 = vpop.permute.xlu1 %991  ;;  %v2740_v30 = vsub.s32 3, %v2383_v9 }
 0x431   : > { %v1051_v42 = vmul.f32 %v1025_v18, %v992_v20 }
 0x432   : > { %v1101_v6 = vrot.slane %v2617_v34, %v2740_v30  ;;  %v1109_v28 = vrot.slane %v2636_v1, %v2740_v30  ;;  %v1113_v22 = vrot.slane %v2683_v23, %v2740_v30  ;;  %v1121_v45 = vrot.slane %v2697_v50, %v2740_v30 }
 0x433   : > { %v1059_v63 = vadd.f32 %v1051_v42, %v2651_v35  ;;  %v1084_v35 = vpop.permute.xlu0 %1083 }
 0x434   : > { %1843 = vset.pattern.permute.xlu1 %v2044_v62  ;;  %v996_v15 = vpop.permute.xlu1 %995  ;;  %v904_v62 = vmul.f32 %v893_v11, %v2665_v36 }
 0x435   : > { %v1052_v3 = vmul.f32 %v1029_v46, %v996_v15  ;;  %1411 = vperm.xlu1 %1843, %v2544_v55   ;;  %v1117_v55 = vrot.slane %v2642_v24, %v2740_v30 }
 0x436   : > { %v984_v29 = vadd.f32 %v976_v53, %v904_v62 }
 0x437   : > { %v1060_v19 = vadd.f32 %v1052_v3, %v980_v32  ;;  %v1134_v52 = vmul.f32 %v1117_v55, %v1084_v35  ;;  %v1148_v33 = vpop.permute.xlu0 %1147  ;;  %v1105_v3 = vrot.slane %v2626_v21, %v2740_v30  ;;  %v2796_v55 = vsub.s32 5, %v2383_v9 }
 0x438   : > { %v1004_v39 = vpop.permute.xlu1 %1003 }
 0x439   : > { %v1054_v31 = vmul.f32 %v1037_v4, %v1004_v39  ;;  %v1131_v47 = vmul.f32 %v1105_v3, %v1072_v5  ;;  %v1261_v5 = vrot.slane %v2617_v34, %v2796_v55 }
 0x43b   : > { %v1062_v37 = vadd.f32 %v1054_v31, %v2662_v43  ;;  %v1181_v43 = vrot.slane %v2617_v34, %v2754_v13  ;;  %v2770_v59 = vpop.permute.xlu0 %1159  ;;  %v1139_v35 = vadd.f32 %v1131_v47, %v1059_v63 }
 0x43c   : > { %v1012_v14 = vpop.permute.xlu1 %1011 }
 0x43d   : > { %v1056_v26 = vmul.f32 %v1045_v40, %v1012_v14  ;;  %v1142_v32 = vadd.f32 %v1134_v52, %v1062_v37  ;;  %v1210_v56 = vmul.f32 %v1181_v43, %v1148_v33 }
 0x43f   : > { %v2756_v36 = vadd.f32 %v1056_v26, %v984_v29  ;;  %v2783_v11 = vpop.permute.xlu0 %1231 }
 0x441   : > { %v1068_v25 = vpop.permute.xlu1 %1067 }
 0x442   : > { %v1130_v51 = vmul.f32 %v1101_v6, %v1068_v25  ;;  %v1197_v6 = vrot.slane %v2642_v24, %v2754_v13 }
 0x443   : > { %v2789_v12 = vpop.permute.xlu0 %1095 }
 0x444   : > { %v1138_v38 = vadd.f32 %v1130_v51, %v2692_v41  ;;  %v1041_v41 = vrot.slane %v2697_v50, %v2674_v48 }
 0x445   : > { %v1076_v17 = vpop.permute.xlu1 %1075 }
 0x446   : > { %v1132_v16 = vmul.f32 %v1109_v28, %v1076_v17  ;;  %v1218_v44 = vadd.f32 %v1210_v56, %v1138_v38  ;;  %v1055_v18 = vmul.f32 %v1041_v41, %v2706_v0  ;;  %v1185_v0 = vrot.slane %v2626_v21, %v2754_v13 }
 0x447   : > { %v2800_v37 = vpop.permute.xlu0 %1239  ;;  %v1269_v28 = vrot.slane %v2636_v1, %v2796_v55  ;;  %v2813_v17 = vsub.s32 6, %v2383_v9 }
 0x448   : > { %v1140_v60 = vadd.f32 %v1132_v16, %v1060_v19  ;;  %v1063_v46 = vadd.f32 %v1055_v18, %v2716_v2  ;;  %v1189_v2 = vrot.slane %v2636_v1, %v2754_v13 }
 0x449   : > { %v1080_v7 = vpop.permute.xlu1 %1079 }
 0x44a   : > { %v1133_v49 = vmul.f32 %v1113_v22, %v1080_v7 }
 0x44b   : > { %v2804_v26 = vpop.permute.xlu0 %1171 }
 0x44c   : > { %v2776_v20 = vadd.f32 %v1133_v49, %v1061_v54 }
 0x44d   : > { %v1088_v42 = vpop.permute.xlu1 %1087 }
 0x44e   : > { %v1135_v15 = vmul.f32 %v1121_v45, %v1088_v42 }
 0x44f   : > { %v2808_v43 = vpop.permute.xlu0 %1247 }
 0x450   : > { %v2785_v19 = vadd.f32 %v1135_v15, %v1063_v46  ;;  %v1277_v46 = vrot.slane %v2642_v24, %v2796_v55  ;;  %v1357_v15 = vrot.slane %v2642_v24, %v2813_v17 }
 0x452   : > { %v1152_v4 = vpop.permute.xlu1 %1151 }
 0x453   : > { %v1211_v39 = vmul.f32 %v1185_v0, %v1152_v4  ;;  %v1388_v38 = vpop.permute.xlu0 %1387 }
 0x455   : > { %v2791_v62 = vadd.f32 %v1211_v39, %v1139_v35 }
 0x456   : > { %v1156_v31 = vpop.permute.xlu1 %1155 }
 0x457   : > { %v1212_v53 = vmul.f32 %v1189_v2, %v1156_v31  ;;  %v1324_v22 = vpop.permute.xlu0 %1323 }
 0x458   : > { %v1374_v0 = vmul.f32 %v1357_v15, %v1324_v22  ;;  %v1049_v22 = vrot.slane %v2702_v58, %v2674_v48 }
 0x459   : > { %v1220_v52 = vadd.f32 %v1212_v53, %v1140_v60  ;;  %v1341_v60 = vrot.slane %v2617_v34, %v2813_v17  ;;  %v1349_v53 = vrot.slane %v2636_v1, %v2813_v17 }
 0x45b   : > { %v1228_v63 = vpop.permute.xlu1 %1227  ;;  %v1396_v42 = vpop.permute.xlu0 %1395 }
 0x45c   : > { %v1290_v40 = vmul.f32 %v1261_v5, %v1228_v63 }
 0x45e   : > { %v1298_v14 = vadd.f32 %v1290_v40, %v1218_v44  ;;  %v2816_v44 = vsub.s32 7, %v2383_v9 }
 0x45f   : > { %v1404_v47 = vpop.permute.xlu0 %1403 }
 0x460   : > { %v2802_v29 = vpop.permute.xlu1 %1091  ;;  %v1437_v4 = vrot.slane %v2642_v24, %v2816_v44  ;;  %v1429_v5 = vrot.slane %v2636_v1, %v2816_v44  ;;  %v1193_v24 = vrot.slane %v2683_v23, %v2754_v13  ;;  %v1353_v1 = vrot.slane %v2683_v23, %v2813_v17 }
 0x462   : > { %v1454_v39 = vmul.f32 %v1437_v4, %v1404_v47  ;;  %v1452_v40 = vmul.f32 %v1429_v5, %v1396_v42  ;;  %v1285_v4 = vrot.slane %v2730_v10, %v2796_v55 }
 0x465   : > { %v1164_v33 = vpop.permute.xlu1 %1163 }
 0x466   : > { %v1214_v25 = vmul.f32 %v1197_v6, %v1164_v33  ;;  %v1265_v6 = vrot.slane %v2626_v21, %v2796_v55  ;;  %v1345_v33 = vrot.slane %v2626_v21, %v2813_v17 }
 0x468   : > { %v1222_v51 = vadd.f32 %v1214_v25, %v1142_v32  ;;  %v1421_v32 = vrot.slane %v2617_v34, %v2816_v44 }
 0x469   : > { %v1168_v56 = vpop.permute.xlu1 %1167 }
 0x46a   : > { %v1450_v54 = vmul.f32 %v1421_v32, %v1388_v38  ;;  %v1201_v32 = vrot.slane %v2697_v50, %v2754_v13 }
 0x46c   : > { %v1215_v42 = vmul.f32 %v1201_v32, %v1168_v56 }
 0x46e   : > { %v1236_v57 = vpop.permute.xlu1 %1235 }
 0x46f   : > { %v1292_v16 = vmul.f32 %v1269_v28, %v1236_v57  ;;  %v1425_v28 = vrot.slane %v2626_v21, %v2816_v44  ;;  %v1291_v57 = vmul.f32 %v1265_v6, %v2783_v11  ;;  %v1129_v21 = vrot.slane %v2702_v58, %v2740_v30 }
 0x470   : > { %v1205_v11 = vrot.slane %v2730_v10, %v2754_v13 }
 0x471   : > { %v1300_v27 = vadd.f32 %v1292_v16, %v1220_v52 }
 0x473   : > { %v1308_v7 = vpop.permute.xlu1 %1307 }
 0x474   : > { %v1370_v41 = vmul.f32 %v1341_v60, %v1308_v7  ;;  %v1433_v60 = vrot.slane %v2683_v23, %v2816_v44  ;;  %v1281_v7 = vrot.slane %v2697_v50, %v2796_v55 }
 0x476   : > { %v1378_v49 = vadd.f32 %v1370_v41, %v1298_v14  ;;  %v1441_v41 = vrot.slane %v2697_v50, %v2816_v44 }
 0x477   : > { %v1312_v18 = vpop.permute.xlu1 %1311 }
 0x478   : > { %v1458_v45 = vadd.f32 %v1450_v54, %v1378_v49  ;;  %v1299_v54 = vadd.f32 %v1291_v57, %v2791_v62 }
 0x47a   : > { %v1474_v16 = vmul.f32 0.01, %v1458_v45  ;;  %vm1466_vm11 = vcmp.gt.f32.partialorder %v1458_v45, 0.0 }
 0x47c   : > { %v1244_v9 = vpop.permute.xlu1 %1243  ;;  %v1482_v15 = vsel %vm1466_vm11, %v1458_v45, %v1474_v16  ;;  %vm1531_vm11 = vcmask 523520  }
 0x47d   : > { %v1294_v3 = vmul.f32 %v1277_v46, %v1244_v9  ;;  %v1514_v5 = vrot.slane %v1482_v15, 2  ;;  %v1552_v6 = vrot.slane %v1482_v15, 4  ;;  %v1605_v57 = vrot.slane %v1482_v15, 7 }
 0x47f   : > { %v1302_v34 = vadd.f32 %v1294_v3, %v1222_v51  ;;  %v1273_v51 = vrot.slane %v2683_v23, %v2796_v55 }
 0x481   : > { %v2828_v35 = vpop.permute.xlu1 %1175  ;;  %v1382_v2 = vadd.f32 %v1374_v0, %v1302_v34  ;;  %v1209_v0 = vrot.slane %v2702_v58, %v2754_v13  ;;  %v1361_v34 = vrot.slane %v2697_v50, %v2813_v17  ;;  %v1293_v48 = vmul.f32 %v1273_v51, %v2800_v37 }
 0x482   : > { %v1216_v50 = vmul.f32 %v1205_v11, %v2804_v26 }
 0x483   : > { %v2830_v31 = vadd.f32 %v1454_v39, %v1382_v2  ;;  %v1213_v39 = vmul.f32 %v1193_v24, %v2770_v59  ;;  %v1223_v2 = vadd.f32 %v1215_v42, %v2785_v19  ;;  %v1217_v51 = vmul.f32 %v1209_v0, %v2828_v35 }
 0x485   : > { %vm1470_vm1 = vcmp.gt.f32.partialorder %v2830_v31, 0.0 }
 0x486   : > { %v1316_v52 = vpop.permute.xlu1 %1315 }
 0x487   : > { %v1372_v63 = vmul.f32 %v1349_v53, %v1316_v52  ;;  %v1498_v53 = vrot.slane %v1482_v15, 1 }
 0x489   : > { %v1380_v14 = vadd.f32 %v1372_v63, %v1300_v27  ;;  %v1371_v27 = vmul.f32 %v1345_v33, %v1312_v18  ;;  %v1125_v18 = vrot.slane %v2730_v10, %v2740_v30  ;;  %v1533_v63 = vrot.slane %v1482_v15, 3 }
 0x48a   : > { %v2842_v25 = vpop.permute.xlu1 %1319  ;;  %v1571_v33 = vrot.slane %v1482_v15, 5  ;;  %v1445_v30 = vrot.slane %v2730_v10, %v2816_v44 }
 0x48b   : > { %v1460_v38 = vadd.f32 %v1452_v40, %v1380_v14  ;;  %v1379_v3 = vadd.f32 %v1371_v27, %v1299_v54 }
 0x48d   : > { %v1476_v46 = vmul.f32 0.01, %v1460_v38  ;;  %vm1468_vm12 = vcmp.gt.f32.partialorder %v1460_v38, 0.0 }
 0x48f   : > { %v1392_v9 = vpop.permute.xlu1 %1391  ;;  %v1484_v52 = vsel %vm1468_vm12, %v1460_v38, %v1476_v46  ;;  %vm1550_vm12 = vcmask 785920  }
 0x490   : > { %v1451_v47 = vmul.f32 %v1425_v28, %v1392_v9  ;;  %v1587_v28 = vrot.slane %v1482_v15, 6  ;;  %v1500_v16 = vrot.slane %v1484_v52, 7  ;;  %v1574_v27 = vrot.slane %v1484_v52, 3 }
 0x491   : > { %v1536_v54 = vrot.slane %v1484_v52, 1  ;;  %v1555_v62 = vrot.slane %v1484_v52, 2  ;;  %v1590_v49 = vrot.slane %v1484_v52, 4 }
 0x492   : > { %v1459_v56 = vadd.f32 %v1451_v47, %v1379_v3 }
 0x494   : > { %vm1467_vm15 = vcmp.gt.f32.partialorder %v1459_v56, 0.0  ;;  %v1475_v40 = vmul.f32 0.01, %v1459_v56  ;;  %v2882_v14 = vpop.permute.xlu1 %1251 }
 0x495   : > { %v1296_v35 = vmul.f32 %v1285_v4, %v2882_v14 }
 0x496   : > { %v1483_v32 = vsel %vm1467_vm15, %v1459_v56, %v1475_v40 }
 0x497   : > { %v1499_v59 = vsel %vm470_vm13, %v1483_v32, %v1498_v53  ;;  %v1515_v24 = vrot.slane %v1483_v32, 1  ;;  %v1534_v19 = vrot.slane %v1483_v32, 2  ;;  %v1553_v42 = vrot.slane %v1483_v32, 3 }
 0x498   : > { %v2886_v38 = vsel %vm471_vm14, %v1500_v16, %v1499_v59  ;;  %v1572_v46 = vrot.slane %v1483_v32, 4  ;;  %v1588_v9 = vrot.slane %v1483_v32, 5  ;;  %v1606_v3 = vrot.slane %v1483_v32, 6  ;;  %v1256_v47 = vpop.permute.xlu1 %1255  ;;  %v1408_v59 = vpop.permute.xlu0 %1407 }
 0x499   : > { %v1535_v45 = vsel %vm470_vm13, %v1534_v19, %v1533_v63  ;;  %v1516_v15 = vsel %vm470_vm13, %v1515_v24, %v1514_v5  ;;  %v1554_v16 = vsel %vm470_vm13, %v1553_v42, %v1552_v6  ;;  %v1608_v24 = vrot.slane %v1484_v52, 5 }
 0x49a   : > { %v1573_v56 = vsel %vm470_vm13, %v1572_v46, %v1571_v33  ;;  %v2892_v53 = vsel %vm471_vm14, %v1536_v54, %v1535_v45  ;;  %v2895_v40 = vsel %vm471_vm14, %v1484_v52, %v1516_v15  ;;  %v2902_v63 = vsel %vm471_vm14, %v1555_v62, %v1554_v16 }
 0x49b   : > { %v2899_v32 = vsel %vm471_vm14, %v1574_v27, %v1573_v56  ;;  %v1589_v5 = vsel %vm470_vm13, %v1588_v9, %v1587_v28  ;;  %v1295_v45 = vmul.f32 %v1281_v7, %v2808_v43  ;;  %v1369_v33 = vrot.slane %v2702_v58, %v2813_v17 }
 0x49c   : > { %v2912_v6 = vsel %vm471_vm14, %v1590_v49, %v1589_v5  ;;  %v1607_v27 = vsel %vm470_vm13, %v1606_v3, %v1605_v57  ;;  %v1057_v62 = vmul.f32 %v1049_v22, %v2722_v8  ;;  %v1221_v52 = vadd.f32 %v1213_v39, %v2776_v20  ;;  %v1416_v22 = vpop.permute.xlu0 %1415 }
 0x49d   : > { %v1136_v28 = vmul.f32 %v1125_v18, %v2802_v29  ;;  %v1328_v54 = vpop.permute.xlu1 %1327  ;;  %v2922_v43 = vsel %vm471_vm14, %v1608_v24, %v1607_v27  ;;  %v1137_v7 = vmul.f32 %v1129_v21, %v2789_v12  ;;  %v1478_v49 = vmul.f32 0.01, %v2830_v31 }
 0x49e   : > { %v1303_v57 = vadd.f32 %v1295_v45, %v1223_v2  ;;  %v1375_v19 = vmul.f32 %v1361_v34, %v1328_v54  ;;  %v1373_v8 = vmul.f32 %v1353_v1, %v2842_v25  ;;  %v1065_v20 = vadd.f32 %v1057_v62, %v2725_v61 }
 0x49f   : > { %v1455_v12 = vmul.f32 %v1441_v41, %v1408_v59  ;;  %v1144_v37 = vadd.f32 %v1136_v28, %v2756_v36  ;;  %v1301_v25 = vadd.f32 %v1293_v48, %v1221_v52  ;;  %v2950_v21 = vsel %vm1470_vm1, %v2830_v31, %v1478_v49 }
 0x4a0   : > { %v1383_v29 = vadd.f32 %v1375_v19, %v1303_v57  ;;  %v1145_v1 = vadd.f32 %v1137_v7, %v1065_v20  ;;  %v3090_v31 = vrot.slane %v2702_v58, %v2816_v44  ;;  %v3091_v34 = vrot.slane %v2702_v58, %v2796_v55 }
 0x4a1   : > { %v1381_v36 = vadd.f32 %v1373_v8, %v1301_v25  ;;  %v1504_v26 = vrot.slane %v2950_v21, 5  ;;  %v1224_v2 = vadd.f32 %v1216_v50, %v1144_v37  ;;  %v1539_v14 = vrot.slane %v2950_v21, 7 }
 0x4a2   : > { %v1463_v61 = vadd.f32 %v1455_v12, %v1383_v29  ;;  %v1400_v18 = vpop.permute.xlu1 %1399  ;;  %v1457_v0 = vmul.f32 %v3090_v31, %v1416_v22  ;;  %v1297_v39 = vmul.f32 %v3091_v34, %v1256_v47  ;;  %v1225_v11 = vadd.f32 %v1217_v51, %v1145_v1 }
 0x4a3   : > { %v1453_v41 = vmul.f32 %v1433_v60, %v1400_v18  ;;  %v1520_v23 = vrot.slane %v2950_v21, 6  ;;  %v1594_v60 = vrot.slane %v2950_v21, 2  ;;  %v1304_v46 = vadd.f32 %v1296_v35, %v1224_v2 }
 0x4a4   : > { %vm1471_vm5 = vcmp.gt.f32.partialorder %v1463_v61, 0.0  ;;  %v1479_v13 = vmul.f32 0.01, %v1463_v61  ;;  %v1612_v55 = vrot.slane %v2950_v21, 3  ;;  %v1305_v47 = vadd.f32 %v1297_v39, %v1225_v11 }
 0x4a5   : > { %v1461_v42 = vadd.f32 %v1453_v41, %v1381_v36  ;;  %v3092_v56 = vrot.slane %v2730_v10, %v2813_v17  ;;  %vm1569_vm13 = vcmask 1048320  }
 0x4a6   : > { %v1487_v4 = vsel %vm1471_vm5, %v1463_v61, %v1479_v13 }
 0x4a7   : > { %vm1469_vm6 = vcmp.gt.f32.partialorder %v1461_v42, 0.0  ;;  %v1477_v9 = vmul.f32 0.01, %v1461_v42  ;;  %v1332_v3 = vpop.permute.xlu1 %1331  ;;  %v1506_v15 = vrot.slane %v1487_v4, 4  ;;  %v1541_v59 = vrot.slane %v1487_v4, 6 }
 0x4a8   : > { %v1376_v16 = vmul.f32 %v3092_v56, %v1332_v3  ;;  %v1522_v24 = vrot.slane %v1487_v4, 5  ;;  %v1560_v45 = vrot.slane %v1487_v4, 7  ;;  %v1596_v27 = vrot.slane %v1487_v4, 1 }
 0x4a9   : > { %v1485_v5 = vsel %vm1469_vm6, %v1461_v42, %v1477_v9  ;;  %v1614_v54 = vrot.slane %v1487_v4, 2 }
 0x4aa   : > { %v1502_v62 = vrot.slane %v1485_v5, 6  ;;  %v1576_v52 = vrot.slane %v1485_v5, 2  ;;  %v1538_v28 = vsel %vm473_vm2, %v1485_v5, %v2892_v53  ;;  %v1518_v57 = vrot.slane %v1485_v5, 7 }
 0x4ab   : > { %v1336_v7 = vpop.permute.xlu1 %1335  ;;  %v1540_v49 = vsel %vm475_vm3, %v1539_v14, %v1538_v28  ;;  %v1557_v19 = vrot.slane %v1485_v5, 1  ;;  %v1592_v48 = vrot.slane %v1485_v5, 3  ;;  %v1610_v51 = vrot.slane %v1485_v5, 4 }
 0x4ac   : > { %v1503_v8 = vsel %vm473_vm2, %v1502_v62, %v2886_v38  ;;  %v1577_v20 = vsel %vm473_vm2, %v1576_v52, %v2899_v32  ;;  %v1377_v12 = vmul.f32 %v1369_v33, %v1336_v7  ;;  %v1542_v29 = vsel %vm477_vm4, %v1541_v59, %v1540_v49 }
 0x4ad   : > { %v1519_v53 = vsel %vm473_vm2, %v1518_v57, %v2895_v40  ;;  %v1558_v22 = vsel %vm473_vm2, %v1557_v19, %v2902_v63  ;;  %v1593_v37 = vsel %vm473_vm2, %v1592_v48, %v2912_v6  ;;  %v1611_v63 = vsel %vm473_vm2, %v1610_v51, %v2922_v43 }
 0x4ae   : > { %v1385_v38 = vadd.f32 %v1377_v12, %v1305_v47  ;;  %v1521_v25 = vsel %vm475_vm3, %v1520_v23, %v1519_v53  ;;  %v1559_v32 = vsel %vm475_vm3, %v2950_v21, %v1558_v22  ;;  %v1595_v58 = vsel %vm475_vm3, %v1594_v60, %v1593_v37 }
 0x4af   : > { %v1523_v17 = vsel %vm477_vm4, %v1522_v24, %v1521_v25  ;;  %v1561_v33 = vsel %vm477_vm4, %v1560_v45, %v1559_v32  ;;  %v1597_v40 = vsel %vm477_vm4, %v1596_v27, %v1595_v58  ;;  %v1578_v6 = vrot.slane %v2950_v21, 1 }
 0x4b0   : > { %v1465_v1 = vadd.f32 %v1457_v0, %v1385_v38  ;;  %v1412_v61 = vpop.permute.xlu1 %1411  ;;  %v1613_v18 = vsel %vm475_vm3, %v1612_v55, %v1611_v63  ;;  %v1505_v50 = vsel %vm475_vm3, %v1504_v26, %v1503_v8  ;;  %v1384_v36 = vadd.f32 %v1376_v16, %v1304_v46 }
 0x4b1   : > { %v1456_v35 = vmul.f32 %v1445_v30, %v1412_v61  ;;  %v1615_v41 = vsel %vm477_vm4, %v1614_v54, %v1613_v18  ;;  %v1507_v31 = vsel %vm477_vm4, %v1506_v15, %v1505_v50  ;;  %v1579_v21 = vsel %vm475_vm3, %v1578_v6, %v1577_v20 }
 0x4b2   : > { %vm1473_vm7 = vcmp.gt.f32.partialorder %v1465_v1, 0.0  ;;  %v1481_v43 = vmul.f32 0.01, %v1465_v1  ;;  %v1580_v34 = vsel %vm477_vm4, %v1487_v4, %v1579_v21 }
 0x4b3   : > { %v1464_v0 = vadd.f32 %v1456_v35, %v1384_v36 }
 0x4b4   : > { %v1489_v39 = vsel %vm1473_vm7, %v1465_v1, %v1481_v43 }
 0x4b5   : > { %vm1472_vm8 = vcmp.gt.f32.partialorder %v1464_v0, 0.0  ;;  %v1480_v13 = vmul.f32 0.01, %v1464_v0  ;;  %v1545_v26 = vrot.slane %v1489_v39, 4  ;;  %v1526_v44 = vrot.slane %v1489_v39, 3 }
 0x4b6   : > { %v1564_v30 = vrot.slane %v1489_v39, 5  ;;  %v1599_v11 = vrot.slane %v1489_v39, 7  ;;  %v1510_v23 = vrot.slane %v1489_v39, 2  ;;  %v1583_v62 = vrot.slane %v1489_v39, 6 }
 0x4b7   : > { %v1488_v10 = vsel %vm1472_vm8, %v1464_v0, %v1480_v13 }
 0x4b8   : > { %v1508_v2 = vrot.slane %v1488_v10, 3  ;;  %v1543_v42 = vrot.slane %v1488_v10, 5  ;;  %v1524_v14 = vrot.slane %v1488_v10, 4  ;;  %v1581_v60 = vrot.slane %v1488_v10, 7 }
 0x4b9   : > { %v1562_v46 = vrot.slane %v1488_v10, 6  ;;  %v1598_v9 = vsel %vm479_vm9, %v1488_v10, %v1597_v40  ;;  %v1616_v4 = vrot.slane %v1488_v10, 1 }
 0x4ba   : > { %v1544_v3 = vsel %vm479_vm9, %v1543_v42, %v1542_v29  ;;  %v1525_v55 = vsel %vm479_vm9, %v1524_v14, %v1523_v17  ;;  %v1600_v47 = vsel %vm481_vm10, %v1599_v11, %v1598_v9  ;;  %v1509_v15 = vsel %vm479_vm9, %v1508_v2, %v1507_v31 }
 0x4bb   : > { %v1546_v56 = vsel %vm481_vm10, %v1545_v26, %v1544_v3  ;;  %v1527_v16 = vsel %vm481_vm10, %v1526_v44, %v1525_v55  ;;  %v1563_v59 = vsel %vm479_vm9, %v1562_v46, %v1561_v33  ;;  %v1617_v5 = vsel %vm479_vm9, %v1616_v4, %v1615_v41 }
 0x4bc   : > { %1547 = vrot.lane.b32.xlu0 %v1546_v56, %s2046_s28  ;;  %1528 = vrot.lane.b32.xlu1 %v1527_v16, %s2047_s7  ;;  %v1565_v24 = vsel %vm481_vm10, %v1564_v30, %v1563_v59  ;;  %v1618_v45 = vsel %vm481_vm10, %v1489_v39, %v1617_v5  ;;  %v1511_v27 = vsel %vm481_vm10, %v1510_v23, %v1509_v15 }
 0x4bd   : > { %1513 = vst.msk [vmem:[%s174_s16] sm:$0xff] %vm190_vm0, %v1511_v27  ;;  %v1582_v52 = vsel %vm479_vm9, %v1581_v60, %v1580_v34 }
 0x4be   : > { %v1584_v28 = vsel %vm481_vm10, %v1583_v62, %v1582_v52 }
 0x4bf   : > { %1586 = vst.msk [vmem:[%s174_s16 + $0x8] sm:$0xff] %vm190_vm0, %v1584_v28 }
 0x4c0   : > { %1566 = vrot.lane.b32.xlu0 %v1565_v24, %s2048_s17  ;;  %1601 = vrot.lane.b32.xlu1 %v1600_v47, %s2047_s7 }
 0x4c4   : > { %1619 = vrot.lane.b32.xlu1 %v1618_v45, %s2046_s28 }
 0x52e   : > { %v1548_v54 = vpop.permute.xlu0 %1547  ;;  %v1529_v7 = vpop.permute.xlu1 %1528 }
 0x52f   : > { %1532 = vst.msk [vmem:[%s174_s16] sm:$0xff] %vm1531_vm11, %v1529_v7 }
 0x530   : > { %1551 = vst.msk [vmem:[%s174_s16] sm:$0xff] %vm1550_vm12, %v1548_v54 }
 0x532   : > { %v1567_v49 = vpop.permute.xlu0 %1566  ;;  %v1602_v57 = vpop.permute.xlu1 %1601 }
 0x533   : > { %1570 = vst.msk [vmem:[%s174_s16] sm:$0xff] %vm1569_vm13, %v1567_v49 }
 0x534   : > { %1604 = vst.msk [vmem:[%s174_s16 + $0x8] sm:$0xff] %vm1531_vm11, %v1602_v57 }
 0x536   : > { %v1620_v19 = vpop.permute.xlu1 %1619 }
 0x537   : > { %1622 = vst.msk [vmem:[%s174_s16 + $0x8] sm:$0xff] %vm1550_vm12, %v1620_v19 }
 0x538   : > { %1977 = shalt.err (!%p1974_p0)
}
 0x539   : > { %s1978_s19 = scalar_lea.hbm %s3034_s3, 256  ;;  %s1982_s25 = scalar_lea.hbm %s3073_s2, 512 }
 0x53a   : > { %p1979_p4 = scmp.ne.s32.totalorder %s3034_s3, %s1978_s19  ;;  %p1983_p6 = scmp.lt.s32.totalorder %s3034_s3, %s3073_s2 }
 0x53b   : > { %p1984_p13 = scmp.lt.s32.totalorder %s1982_s25, %s1978_s19 }
 0x53c   : > { %p1980_p11 = pnand %p1979_p4, %p3093_p1 }
 0x53d   : > { %p1985_p3 = por %p1984_p13, %p1983_p6 }
 0x53e   : > { %p1981_p5 = pneg %p1980_p11 }
 0x540   : > { %p1986_p12 = pnand %p1985_p3, %p1981_p5 }
 0x542   : > { %1989 = shalt.err (!%p1986_p12)
}
 0x543   : > { %1748 = dma.vmem_to_hbm [thread:$0]  (%p3093_p1), %s1639_s29, 256, %s3034_s3, %s1624_s4  }
 0x544 PF: > { %s1650_s28 = sand.u32 1, %s2020_s9   ;;  %p3094_p7 = scmp.ne.s32.totalorder %s3081_s22, 0 }
 0x545   : > { %p3095_p8 = scmp.ge.s32.totalorder %s2032_s12, 2  ;;  %s1651_s7 = scalar_lea.sflag [#allocation4], %s1650_s28 }
 0x547   : > { %p1759_p9 = pnand %p3095_p8, %p3094_p7 }
 0x549   : > { %p1760_p10 = pneg %p1759_p9 }
 0x54b   : > { %2015 = dma.done.wait (%p1760_p10), %s1651_s7, 256  }
 0x54c   : > { %2017 = vsyncadd (%p1760_p10), %s1651_s7, 4294967040  ;;  %p16_p2 = scmp.ge.s32.totalorder %s2090_s15, 4   ;;  %s3096_s9 = smov %s2024_s10 }
 0x54d   : > { %s3097_s10 = smov %s2028_s11  ;;  %s3098_s11 = smov %s2102_s18 }
 0x54e   : > { %s3099_s12 = smov %s2090_s15  ;;  %18 = sbr.rel (!%p16_p2) target bundleno = 6 (0x6), region = 77 }
 0x553   :  { %1656 = vsyncpa [#allocation3], 1 }
 0x554   :  { %1658 = vsyncpa [#allocation3 + $0x1], 1 }
 0x555   :  { %1659 = vsyncpa [#allocation6], 1 }
 0x556   :  { %1660 = vsyncpa [#allocation4], 1 }
 0x557   :  { %1662 = vsyncpa [#allocation4 + $0x1], 1 }

</bundles_post_ra>
